<compile_context>
chip_gen: v5e
topology: v5e:2x2
jax: 0.10.0
libtpu: 0.0.40
codegen_flags: <defaults>
</compile_context>

<pallas_src>
import functools

import jax
import jax.numpy as jnp
from jax.experimental import pallas as pl
from jax.experimental.pallas import tpu as pltpu

KSIZE = 7
PAD = 3


def _spatial_attention_kernel(w_ref, col_ref, x_ref, o_ref, *, H, W):
    # w_ref   : (49,)          f32 SMEM  -- flattened 7x7 conv weight (scalar reads)
    # col_ref : (1, 1, HWp)    i32 VMEM  -- per-position column index (pos % W)
    # x_ref   : (Bblk, C, HWp)     VMEM  -- lane-dense, unpadded input block
    # o_ref   : (Bblk, 1, HWp)     VMEM  -- lane-dense output block
    HWp = x_ref.shape[2]

    # Channel max in the input dtype (exact for bf16); upcast only the result.
    m = jnp.max(x_ref[...], axis=1, keepdims=True).astype(jnp.float32)  # (Bblk,1,HWp)

    # Row masks only need the flat position (no integer division); column masks
    # use the small precomputed column-index table.
    pos = jax.lax.broadcasted_iota(jnp.int32, (1, 1, HWp), 2)
    col = col_ref[...]
    row_ok = []
    col_ok = []
    for k in range(KSIZE):
        d = k - PAD
        row_ok.append(jnp.logical_and(pos >= (-d) * W, pos < (H - d) * W))
        col_ok.append(jnp.logical_and(col + d >= 0, col + d < W))

    # 7x7 "same" conv as 49 rolled + masked MACs on the flat map.  pltpu.roll
    # runs on the XLU (otherwise idle here); the masks reproduce the zero
    # padding of the reference without materializing padded VMEM copies.
    # TODO(synk): for large maps (H, W >= ~64) fold the ky reduction onto the
    # MXU with a banded Toeplitz matmul per kx instead of per-tap VPU MACs.
    acc = jnp.zeros_like(m)
    for ky in range(KSIZE):
        dy = ky - PAD
        for kx in range(KSIZE):
            dx = kx - PAD
            wgt = w_ref[ky * KSIZE + kx]
            if dy == 0 and dx == 0:
                tap = m
            else:
                shift = (-(dy * W + dx)) % HWp
                rolled = pltpu.roll(m, shift=shift, axis=2)
                tap = jnp.where(jnp.logical_and(row_ok[ky], col_ok[kx]),
                                rolled, 0.0)
            acc = acc + wgt * tap

    o_ref[...] = jax.nn.sigmoid(acc).astype(o_ref.dtype)


def _round_up(n, m):
    return (n + m - 1) // m * m


def _vmem_params():
    """(block budget, vmem_limit_bytes) tuned per TPU generation."""
    try:
        phys = int(pltpu.get_tpu_info().vmem_capacity_bytes)
    except Exception:
        phys = 64 * 1024 * 1024          # assume the smallest (v7x per-TC VMEM)
    if phys >= 128 * 1024 * 1024:        # v5e / v6e: 128 MiB physical VMEM
        return 48 * 1024 * 1024, 96 * 1024 * 1024
    return 20 * 1024 * 1024, 48 * 1024 * 1024   # v7x: 64 MiB per TensorCore


def _choose_block_b(B, C, HWp, itemsize, vmem_budget):
    """Batch elements per grid step.

    Counts the (up to triple-buffered) lane-dense input block plus in-kernel
    f32 temporaries (max map, rolled/masked slabs, accumulator, boolean masks)
    with a 1.25x safety factor, and keeps >=4 total grid steps when B allows so
    each v7x TensorCore still gets >=2 pipelined steps."""
    in_per_b = 3 * _round_up(C, 8) * HWp * itemsize
    tmp_per_b = 8 * HWp * 4 * 8
    per_b = int(1.25 * (in_per_b + tmp_per_b))
    cap = max(1, vmem_budget // per_b)
    if B >= 4:
        cap = min(cap, B // 4)
    elif B >= 2:
        cap = min(cap, B // 2)
    bb = max(1, min(cap, B))
    while B % bb:
        bb -= 1
    return bb


def spatial_attention(x, w):
    """x: (B, C, H, W), w: (7, 7) conv kernel.
    Returns sigmoid(conv7x7(max_c(x))) with shape (B, 1, H, W)."""
    B, C, H, W = x.shape
    HW = H * W
    HWp = _round_up(HW, 128)

    # Free layout change: collapse contiguous minor dims to a lane-dense axis.
    x_flat = x.reshape(B, C, HW)
    if HWp != HW:
        x_flat = jnp.pad(x_flat, ((0, 0), (0, 0), (0, HWp - HW)))
    col_idx = (jnp.arange(HWp, dtype=jnp.int32) % W).reshape(1, 1, HWp)
    w_flat = w.reshape(-1).astype(jnp.float32)

    budget, vmem_limit = _vmem_params()
    block_b = _choose_block_b(B, C, HWp, x.dtype.itemsize, budget)
    n_steps = B // block_b

    x_block = (block_b, C, HWp)
    x_index = lambda b: (b, 0, 0)
    if n_steps >= 3:
        # Third buffer hides DMA jitter on this HBM-bound kernel.
        x_spec = pl.BlockSpec(x_block, x_index, pipeline_mode=pl.Buffered(3))
    else:
        x_spec = pl.BlockSpec(x_block, x_index)

    kernel = functools.partial(_spatial_attention_kernel, H=H, W=W)
    out_flat = pl.pallas_call(
        kernel,
        out_shape=jax.ShapeDtypeStruct((B, 1, HWp), x.dtype),
        grid=(n_steps,),
        in_specs=[
            pl.BlockSpec(memory_space=pltpu.MemorySpace.SMEM),   # (49,) weights
            pl.BlockSpec((1, 1, HWp), lambda b: (0, 0, 0)),      # column-index table
            x_spec,                                              # lane-dense x block
        ],
        out_specs=pl.BlockSpec((block_b, 1, HWp), lambda b: (b, 0, 0)),
        compiler_params=pltpu.CompilerParams(
            dimension_semantics=("parallel",),
            vmem_limit_bytes=vmem_limit),
    )(w_flat, col_idx, x_flat)

    return out_flat[:, :, :HW].reshape(B, 1, H, W)


def _reference(x, w):
    max_out = jnp.max(x, axis=1, keepdims=True)
    conv = jax.lax.conv_general_dilated(
        max_out, w[None, None, :, :],
        window_strides=(1, 1), padding=[(PAD, PAD), (PAD, PAD)],
        dimension_numbers=("NCHW", "OIHW", "NCHW"))
    return jax.nn.sigmoid(conv)


if __name__ == "__main__":
    key = jax.random.PRNGKey(0)
    kx, kw = jax.random.split(key)

    B, C, H, W = 2, 4, 16, 16
    x = jax.random.normal(kx, (B, C, H, W), dtype=jnp.float32)

    # Deterministic Kaiming-normal-style init (fan_in = 1*7*7, relu gain).
    fan_in = 1 * KSIZE * KSIZE
    std = (2.0 / fan_in) ** 0.5
    w = jax.random.normal(kw, (KSIZE, KSIZE), dtype=jnp.float32) * std

    out = jax.block_until_ready(spatial_attention(x, w))
    ref = _reference(x, w)

    assert out.shape == (B, 1, H, W)
    assert jnp.allclose(out, ref, atol=1e-5, rtol=1e-5), (
        f"max abs err {jnp.max(jnp.abs(out - ref))}")

    print("KERNEL_OK")
</pallas_src>

<mosaic_0001>
module attributes {stable_mosaic.version = 11 : i64} {
  func.func @_spatial_attention_kernel(%arg0: i32, %arg1: memref<49xf32, #tpu.memory_space<smem>>, %arg2: memref<1x1x256xi32, #tpu.memory_space<vmem>>, %arg3: memref<1x4x256xf32, #tpu.memory_space<vmem>>, %arg4: memref<1x1x256xf32, #tpu.memory_space<vmem>>) attributes {dimension_semantics = [#tpu.dimension_semantics<parallel>], iteration_bounds = array<i64: 2>, scalar_prefetch = 0 : i64, scratch_operands = 0 : i64, tpu.core_type = #tpu.core_type<tc>, window_params = [{transform_indices = @transform_0, window_bounds = array<i64: 49>}, {pipeline_mode = #tpu.pipeline_mode<synchronous>, transform_indices = @transform_1, window_bounds = array<i64: 1, 1, 256>}, {transform_indices = @transform_2, window_bounds = array<i64: 1, 4, 256>}, {transform_indices = @transform_3, window_bounds = array<i64: 1, 1, 256>}]} {
    %c0 = arith.constant 0 : index
    %c0_0 = arith.constant 0 : index
    %c0_1 = arith.constant 0 : index
    %0 = vector.load %arg3[%c0, %c0_0, %c0_1] : memref<1x4x256xf32, #tpu.memory_space<vmem>>, vector<1x4x256xf32>
    %cst = arith.constant dense<0xFF800000> : vector<1x256xf32>
    %1 = vector.multi_reduction <maximumf>, %0, %cst [1] : vector<1x4x256xf32> to vector<1x256xf32>
    %2 = vector.shape_cast %1 : vector<1x256xf32> to vector<1x1x256xf32>
    %3 = tpu.iota {dimensions = array<i32: 2>} : vector<1x1x256xi32>
    %c0_2 = arith.constant 0 : index
    %c0_3 = arith.constant 0 : index
    %c0_4 = arith.constant 0 : index
    %4 = vector.load %arg2[%c0_2, %c0_3, %c0_4] : memref<1x1x256xi32, #tpu.memory_space<vmem>>, vector<1x1x256xi32>
    %c48_i32 = arith.constant 48 : i32
    %5 = vector.broadcast %c48_i32 : i32 to vector<1x1x256xi32>
    %6 = arith.cmpi sge, %3, %5 : vector<1x1x256xi32>
    %c304_i32 = arith.constant 304 : i32
    %7 = vector.broadcast %c304_i32 : i32 to vector<1x1x256xi32>
    %8 = arith.cmpi slt, %3, %7 : vector<1x1x256xi32>
    %9 = arith.andi %6, %8 : vector<1x1x256xi1>
    %c-3_i32 = arith.constant -3 : i32
    %10 = vector.broadcast %c-3_i32 : i32 to vector<1x1x256xi32>
    %11 = arith.addi %4, %10 : vector<1x1x256xi32>
    %c0_i32 = arith.constant 0 : i32
    %12 = vector.broadcast %c0_i32 : i32 to vector<1x1x256xi32>
    %13 = arith.cmpi sge, %11, %12 : vector<1x1x256xi32>
    %c-3_i32_5 = arith.constant -3 : i32
    %14 = vector.broadcast %c-3_i32_5 : i32 to vector<1x1x256xi32>
    %15 = arith.addi %4, %14 : vector<1x1x256xi32>
    %c16_i32 = arith.constant 16 : i32
    %16 = vector.broadcast %c16_i32 : i32 to vector<1x1x256xi32>
    %17 = arith.cmpi slt, %15, %16 : vector<1x1x256xi32>
    %18 = arith.andi %13, %17 : vector<1x1x256xi1>
    %c32_i32 = arith.constant 32 : i32
    %19 = vector.broadcast %c32_i32 : i32 to vector<1x1x256xi32>
    %20 = arith.cmpi sge, %3, %19 : vector<1x1x256xi32>
    %c288_i32 = arith.constant 288 : i32
    %21 = vector.broadcast %c288_i32 : i32 to vector<1x1x256xi32>
    %22 = arith.cmpi slt, %3, %21 : vector<1x1x256xi32>
    %23 = arith.andi %20, %22 : vector<1x1x256xi1>
    %c-2_i32 = arith.constant -2 : i32
    %24 = vector.broadcast %c-2_i32 : i32 to vector<1x1x256xi32>
    %25 = arith.addi %4, %24 : vector<1x1x256xi32>
    %c0_i32_6 = arith.constant 0 : i32
    %26 = vector.broadcast %c0_i32_6 : i32 to vector<1x1x256xi32>
    %27 = arith.cmpi sge, %25, %26 : vector<1x1x256xi32>
    %c-2_i32_7 = arith.constant -2 : i32
    %28 = vector.broadcast %c-2_i32_7 : i32 to vector<1x1x256xi32>
    %29 = arith.addi %4, %28 : vector<1x1x256xi32>
    %c16_i32_8 = arith.constant 16 : i32
    %30 = vector.broadcast %c16_i32_8 : i32 to vector<1x1x256xi32>
    %31 = arith.cmpi slt, %29, %30 : vector<1x1x256xi32>
    %32 = arith.andi %27, %31 : vector<1x1x256xi1>
    %c16_i32_9 = arith.constant 16 : i32
    %33 = vector.broadcast %c16_i32_9 : i32 to vector<1x1x256xi32>
    %34 = arith.cmpi sge, %3, %33 : vector<1x1x256xi32>
    %c272_i32 = arith.constant 272 : i32
    %35 = vector.broadcast %c272_i32 : i32 to vector<1x1x256xi32>
    %36 = arith.cmpi slt, %3, %35 : vector<1x1x256xi32>
    %37 = arith.andi %34, %36 : vector<1x1x256xi1>
    %c-1_i32 = arith.constant -1 : i32
    %38 = vector.broadcast %c-1_i32 : i32 to vector<1x1x256xi32>
    %39 = arith.addi %4, %38 : vector<1x1x256xi32>
    %c0_i32_10 = arith.constant 0 : i32
    %40 = vector.broadcast %c0_i32_10 : i32 to vector<1x1x256xi32>
    %41 = arith.cmpi sge, %39, %40 : vector<1x1x256xi32>
    %c-1_i32_11 = arith.constant -1 : i32
    %42 = vector.broadcast %c-1_i32_11 : i32 to vector<1x1x256xi32>
    %43 = arith.addi %4, %42 : vector<1x1x256xi32>
    %c16_i32_12 = arith.constant 16 : i32
    %44 = vector.broadcast %c16_i32_12 : i32 to vector<1x1x256xi32>
    %45 = arith.cmpi slt, %43, %44 : vector<1x1x256xi32>
    %46 = arith.andi %41, %45 : vector<1x1x256xi1>
    %c0_i32_13 = arith.constant 0 : i32
    %47 = vector.broadcast %c0_i32_13 : i32 to vector<1x1x256xi32>
    %48 = arith.cmpi sge, %3, %47 : vector<1x1x256xi32>
    %c256_i32 = arith.constant 256 : i32
    %49 = vector.broadcast %c256_i32 : i32 to vector<1x1x256xi32>
    %50 = arith.cmpi slt, %3, %49 : vector<1x1x256xi32>
    %51 = arith.andi %48, %50 : vector<1x1x256xi1>
    %c0_i32_14 = arith.constant 0 : i32
    %52 = vector.broadcast %c0_i32_14 : i32 to vector<1x1x256xi32>
    %53 = arith.addi %4, %52 : vector<1x1x256xi32>
    %c0_i32_15 = arith.constant 0 : i32
    %54 = vector.broadcast %c0_i32_15 : i32 to vector<1x1x256xi32>
    %55 = arith.cmpi sge, %53, %54 : vector<1x1x256xi32>
    %c0_i32_16 = arith.constant 0 : i32
    %56 = vector.broadcast %c0_i32_16 : i32 to vector<1x1x256xi32>
    %57 = arith.addi %4, %56 : vector<1x1x256xi32>
    %c16_i32_17 = arith.constant 16 : i32
    %58 = vector.broadcast %c16_i32_17 : i32 to vector<1x1x256xi32>
    %59 = arith.cmpi slt, %57, %58 : vector<1x1x256xi32>
    %60 = arith.andi %55, %59 : vector<1x1x256xi1>
    %c-16_i32 = arith.constant -16 : i32
    %61 = vector.broadcast %c-16_i32 : i32 to vector<1x1x256xi32>
    %62 = arith.cmpi sge, %3, %61 : vector<1x1x256xi32>
    %c240_i32 = arith.constant 240 : i32
    %63 = vector.broadcast %c240_i32 : i32 to vector<1x1x256xi32>
    %64 = arith.cmpi slt, %3, %63 : vector<1x1x256xi32>
    %65 = arith.andi %62, %64 : vector<1x1x256xi1>
    %c1_i32 = arith.constant 1 : i32
    %66 = vector.broadcast %c1_i32 : i32 to vector<1x1x256xi32>
    %67 = arith.addi %4, %66 : vector<1x1x256xi32>
    %c0_i32_18 = arith.constant 0 : i32
    %68 = vector.broadcast %c0_i32_18 : i32 to vector<1x1x256xi32>
    %69 = arith.cmpi sge, %67, %68 : vector<1x1x256xi32>
    %c1_i32_19 = arith.constant 1 : i32
    %70 = vector.broadcast %c1_i32_19 : i32 to vector<1x1x256xi32>
    %71 = arith.addi %4, %70 : vector<1x1x256xi32>
    %c16_i32_20 = arith.constant 16 : i32
    %72 = vector.broadcast %c16_i32_20 : i32 to vector<1x1x256xi32>
    %73 = arith.cmpi slt, %71, %72 : vector<1x1x256xi32>
    %74 = arith.andi %69, %73 : vector<1x1x256xi1>
    %c-32_i32 = arith.constant -32 : i32
    %75 = vector.broadcast %c-32_i32 : i32 to vector<1x1x256xi32>
    %76 = arith.cmpi sge, %3, %75 : vector<1x1x256xi32>
    %c224_i32 = arith.constant 224 : i32
    %77 = vector.broadcast %c224_i32 : i32 to vector<1x1x256xi32>
    %78 = arith.cmpi slt, %3, %77 : vector<1x1x256xi32>
    %79 = arith.andi %76, %78 : vector<1x1x256xi1>
    %c2_i32 = arith.constant 2 : i32
    %80 = vector.broadcast %c2_i32 : i32 to vector<1x1x256xi32>
    %81 = arith.addi %4, %80 : vector<1x1x256xi32>
    %c0_i32_21 = arith.constant 0 : i32
    %82 = vector.broadcast %c0_i32_21 : i32 to vector<1x1x256xi32>
    %83 = arith.cmpi sge, %81, %82 : vector<1x1x256xi32>
    %c2_i32_22 = arith.constant 2 : i32
    %84 = vector.broadcast %c2_i32_22 : i32 to vector<1x1x256xi32>
    %85 = arith.addi %4, %84 : vector<1x1x256xi32>
    %c16_i32_23 = arith.constant 16 : i32
    %86 = vector.broadcast %c16_i32_23 : i32 to vector<1x1x256xi32>
    %87 = arith.cmpi slt, %85, %86 : vector<1x1x256xi32>
    %88 = arith.andi %83, %87 : vector<1x1x256xi1>
    %c-48_i32 = arith.constant -48 : i32
    %89 = vector.broadcast %c-48_i32 : i32 to vector<1x1x256xi32>
    %90 = arith.cmpi sge, %3, %89 : vector<1x1x256xi32>
    %c208_i32 = arith.constant 208 : i32
    %91 = vector.broadcast %c208_i32 : i32 to vector<1x1x256xi32>
    %92 = arith.cmpi slt, %3, %91 : vector<1x1x256xi32>
    %93 = arith.andi %90, %92 : vector<1x1x256xi1>
    %c3_i32 = arith.constant 3 : i32
    %94 = vector.broadcast %c3_i32 : i32 to vector<1x1x256xi32>
    %95 = arith.addi %4, %94 : vector<1x1x256xi32>
    %c0_i32_24 = arith.constant 0 : i32
    %96 = vector.broadcast %c0_i32_24 : i32 to vector<1x1x256xi32>
    %97 = arith.cmpi sge, %95, %96 : vector<1x1x256xi32>
    %c3_i32_25 = arith.constant 3 : i32
    %98 = vector.broadcast %c3_i32_25 : i32 to vector<1x1x256xi32>
    %99 = arith.addi %4, %98 : vector<1x1x256xi32>
    %c16_i32_26 = arith.constant 16 : i32
    %100 = vector.broadcast %c16_i32_26 : i32 to vector<1x1x256xi32>
    %101 = arith.cmpi slt, %99, %100 : vector<1x1x256xi32>
    %102 = arith.andi %97, %101 : vector<1x1x256xi1>
    %cst_27 = arith.constant 0.000000e+00 : f32
    %103 = vector.broadcast %cst_27 : f32 to vector<1x1x256xf32>
    %c0_28 = arith.constant 0 : index
    %104 = memref.load %arg1[%c0_28] : memref<49xf32, #tpu.memory_space<smem>>
    %c51_i32 = arith.constant 51 : i32
    %105 = tpu.dynamic_rotate %2 by %c51_i32 dim 2 : vector<1x1x256xf32>, i32 -> vector<1x1x256xf32>
    %106 = arith.andi %9, %18 : vector<1x1x256xi1>
    %cst_29 = arith.constant 0.000000e+00 : f32
    %107 = vector.broadcast %cst_29 : f32 to vector<1x1x256xf32>
    %108 = arith.select %106, %105, %107 : vector<1x1x256xi1>, vector<1x1x256xf32>
    %109 = vector.broadcast %104 : f32 to vector<1x1x256xf32>
    %110 = arith.mulf %109, %108 : vector<1x1x256xf32>
    %111 = arith.addf %103, %110 : vector<1x1x256xf32>
    %c1 = arith.constant 1 : index
    %112 = memref.load %arg1[%c1] : memref<49xf32, #tpu.memory_space<smem>>
    %c50_i32 = arith.constant 50 : i32
    %113 = tpu.dynamic_rotate %2 by %c50_i32 dim 2 : vector<1x1x256xf32>, i32 -> vector<1x1x256xf32>
    %114 = arith.andi %9, %32 : vector<1x1x256xi1>
    %cst_30 = arith.constant 0.000000e+00 : f32
    %115 = vector.broadcast %cst_30 : f32 to vector<1x1x256xf32>
    %116 = arith.select %114, %113, %115 : vector<1x1x256xi1>, vector<1x1x256xf32>
    %117 = vector.broadcast %112 : f32 to vector<1x1x256xf32>
    %118 = arith.mulf %117, %116 : vector<1x1x256xf32>
    %119 = arith.addf %111, %118 : vector<1x1x256xf32>
    %c2 = arith.constant 2 : index
    %120 = memref.load %arg1[%c2] : memref<49xf32, #tpu.memory_space<smem>>
    %c49_i32 = arith.constant 49 : i32
    %121 = tpu.dynamic_rotate %2 by %c49_i32 dim 2 : vector<1x1x256xf32>, i32 -> vector<1x1x256xf32>
    %122 = arith.andi %9, %46 : vector<1x1x256xi1>
    %cst_31 = arith.constant 0.000000e+00 : f32
    %123 = vector.broadcast %cst_31 : f32 to vector<1x1x256xf32>
    %124 = arith.select %122, %121, %123 : vector<1x1x256xi1>, vector<1x1x256xf32>
    %125 = vector.broadcast %120 : f32 to vector<1x1x256xf32>
    %126 = arith.mulf %125, %124 : vector<1x1x256xf32>
    %127 = arith.addf %119, %126 : vector<1x1x256xf32>
    %c3 = arith.constant 3 : index
    %128 = memref.load %arg1[%c3] : memref<49xf32, #tpu.memory_space<smem>>
    %c48_i32_32 = arith.constant 48 : i32
    %129 = tpu.dynamic_rotate %2 by %c48_i32_32 dim 2 : vector<1x1x256xf32>, i32 -> vector<1x1x256xf32>
    %130 = arith.andi %9, %60 : vector<1x1x256xi1>
    %cst_33 = arith.constant 0.000000e+00 : f32
    %131 = vector.broadcast %cst_33 : f32 to vector<1x1x256xf32>
    %132 = arith.select %130, %129, %131 : vector<1x1x256xi1>, vector<1x1x256xf32>
    %133 = vector.broadcast %128 : f32 to vector<1x1x256xf32>
    %134 = arith.mulf %133, %132 : vector<1x1x256xf32>
    %135 = arith.addf %127, %134 : vector<1x1x256xf32>
    %c4 = arith.constant 4 : index
    %136 = memref.load %arg1[%c4] : memref<49xf32, #tpu.memory_space<smem>>
    %c47_i32 = arith.constant 47 : i32
    %137 = tpu.dynamic_rotate %2 by %c47_i32 dim 2 : vector<1x1x256xf32>, i32 -> vector<1x1x256xf32>
    %138 = arith.andi %9, %74 : vector<1x1x256xi1>
    %cst_34 = arith.constant 0.000000e+00 : f32
    %139 = vector.broadcast %cst_34 : f32 to vector<1x1x256xf32>
    %140 = arith.select %138, %137, %139 : vector<1x1x256xi1>, vector<1x1x256xf32>
    %141 = vector.broadcast %136 : f32 to vector<1x1x256xf32>
    %142 = arith.mulf %141, %140 : vector<1x1x256xf32>
    %143 = arith.addf %135, %142 : vector<1x1x256xf32>
    %c5 = arith.constant 5 : index
    %144 = memref.load %arg1[%c5] : memref<49xf32, #tpu.memory_space<smem>>
    %c46_i32 = arith.constant 46 : i32
    %145 = tpu.dynamic_rotate %2 by %c46_i32 dim 2 : vector<1x1x256xf32>, i32 -> vector<1x1x256xf32>
    %146 = arith.andi %9, %88 : vector<1x1x256xi1>
    %cst_35 = arith.constant 0.000000e+00 : f32
    %147 = vector.broadcast %cst_35 : f32 to vector<1x1x256xf32>
    %148 = arith.select %146, %145, %147 : vector<1x1x256xi1>, vector<1x1x256xf32>
    %149 = vector.broadcast %144 : f32 to vector<1x1x256xf32>
    %150 = arith.mulf %149, %148 : vector<1x1x256xf32>
    %151 = arith.addf %143, %150 : vector<1x1x256xf32>
    %c6 = arith.constant 6 : index
    %152 = memref.load %arg1[%c6] : memref<49xf32, #tpu.memory_space<smem>>
    %c45_i32 = arith.constant 45 : i32
    %153 = tpu.dynamic_rotate %2 by %c45_i32 dim 2 : vector<1x1x256xf32>, i32 -> vector<1x1x256xf32>
    %154 = arith.andi %9, %102 : vector<1x1x256xi1>
    %cst_36 = arith.constant 0.000000e+00 : f32
    %155 = vector.broadcast %cst_36 : f32 to vector<1x1x256xf32>
    %156 = arith.select %154, %153, %155 : vector<1x1x256xi1>, vector<1x1x256xf32>
    %157 = vector.broadcast %152 : f32 to vector<1x1x256xf32>
    %158 = arith.mulf %157, %156 : vector<1x1x256xf32>
    %159 = arith.addf %151, %158 : vector<1x1x256xf32>
    %c7 = arith.constant 7 : index
    %160 = memref.load %arg1[%c7] : memref<49xf32, #tpu.memory_space<smem>>
    %c35_i32 = arith.constant 35 : i32
    %161 = tpu.dynamic_rotate %2 by %c35_i32 dim 2 : vector<1x1x256xf32>, i32 -> vector<1x1x256xf32>
    %162 = arith.andi %23, %18 : vector<1x1x256xi1>
    %cst_37 = arith.constant 0.000000e+00 : f32
    %163 = vector.broadcast %cst_37 : f32 to vector<1x1x256xf32>
    %164 = arith.select %162, %161, %163 : vector<1x1x256xi1>, vector<1x1x256xf32>
    %165 = vector.broadcast %160 : f32 to vector<1x1x256xf32>
    %166 = arith.mulf %165, %164 : vector<1x1x256xf32>
    %167 = arith.addf %159, %166 : vector<1x1x256xf32>
    %c8 = arith.constant 8 : index
    %168 = memref.load %arg1[%c8] : memref<49xf32, #tpu.memory_space<smem>>
    %c34_i32 = arith.constant 34 : i32
    %169 = tpu.dynamic_rotate %2 by %c34_i32 dim 2 : vector<1x1x256xf32>, i32 -> vector<1x1x256xf32>
    %170 = arith.andi %23, %32 : vector<1x1x256xi1>
    %cst_38 = arith.constant 0.000000e+00 : f32
    %171 = vector.broadcast %cst_38 : f32 to vector<1x1x256xf32>
    %172 = arith.select %170, %169, %171 : vector<1x1x256xi1>, vector<1x1x256xf32>
    %173 = vector.broadcast %168 : f32 to vector<1x1x256xf32>
    %174 = arith.mulf %173, %172 : vector<1x1x256xf32>
    %175 = arith.addf %167, %174 : vector<1x1x256xf32>
    %c9 = arith.constant 9 : index
    %176 = memref.load %arg1[%c9] : memref<49xf32, #tpu.memory_space<smem>>
    %c33_i32 = arith.constant 33 : i32
    %177 = tpu.dynamic_rotate %2 by %c33_i32 dim 2 : vector<1x1x256xf32>, i32 -> vector<1x1x256xf32>
    %178 = arith.andi %23, %46 : vector<1x1x256xi1>
    %cst_39 = arith.constant 0.000000e+00 : f32
    %179 = vector.broadcast %cst_39 : f32 to vector<1x1x256xf32>
    %180 = arith.select %178, %177, %179 : vector<1x1x256xi1>, vector<1x1x256xf32>
    %181 = vector.broadcast %176 : f32 to vector<1x1x256xf32>
    %182 = arith.mulf %181, %180 : vector<1x1x256xf32>
    %183 = arith.addf %175, %182 : vector<1x1x256xf32>
    %c10 = arith.constant 10 : index
    %184 = memref.load %arg1[%c10] : memref<49xf32, #tpu.memory_space<smem>>
    %c32_i32_40 = arith.constant 32 : i32
    %185 = tpu.dynamic_rotate %2 by %c32_i32_40 dim 2 : vector<1x1x256xf32>, i32 -> vector<1x1x256xf32>
    %186 = arith.andi %23, %60 : vector<1x1x256xi1>
    %cst_41 = arith.constant 0.000000e+00 : f32
    %187 = vector.broadcast %cst_41 : f32 to vector<1x1x256xf32>
    %188 = arith.select %186, %185, %187 : vector<1x1x256xi1>, vector<1x1x256xf32>
    %189 = vector.broadcast %184 : f32 to vector<1x1x256xf32>
    %190 = arith.mulf %189, %188 : vector<1x1x256xf32>
    %191 = arith.addf %183, %190 : vector<1x1x256xf32>
    %c11 = arith.constant 11 : index
    %192 = memref.load %arg1[%c11] : memref<49xf32, #tpu.memory_space<smem>>
    %c31_i32 = arith.constant 31 : i32
    %193 = tpu.dynamic_rotate %2 by %c31_i32 dim 2 : vector<1x1x256xf32>, i32 -> vector<1x1x256xf32>
    %194 = arith.andi %23, %74 : vector<1x1x256xi1>
    %cst_42 = arith.constant 0.000000e+00 : f32
    %195 = vector.broadcast %cst_42 : f32 to vector<1x1x256xf32>
    %196 = arith.select %194, %193, %195 : vector<1x1x256xi1>, vector<1x1x256xf32>
    %197 = vector.broadcast %192 : f32 to vector<1x1x256xf32>
    %198 = arith.mulf %197, %196 : vector<1x1x256xf32>
    %199 = arith.addf %191, %198 : vector<1x1x256xf32>
    %c12 = arith.constant 12 : index
    %200 = memref.load %arg1[%c12] : memref<49xf32, #tpu.memory_space<smem>>
    %c30_i32 = arith.constant 30 : i32
    %201 = tpu.dynamic_rotate %2 by %c30_i32 dim 2 : vector<1x1x256xf32>, i32 -> vector<1x1x256xf32>
    %202 = arith.andi %23, %88 : vector<1x1x256xi1>
    %cst_43 = arith.constant 0.000000e+00 : f32
    %203 = vector.broadcast %cst_43 : f32 to vector<1x1x256xf32>
    %204 = arith.select %202, %201, %203 : vector<1x1x256xi1>, vector<1x1x256xf32>
    %205 = vector.broadcast %200 : f32 to vector<1x1x256xf32>
    %206 = arith.mulf %205, %204 : vector<1x1x256xf32>
    %207 = arith.addf %199, %206 : vector<1x1x256xf32>
    %c13 = arith.constant 13 : index
    %208 = memref.load %arg1[%c13] : memref<49xf32, #tpu.memory_space<smem>>
    %c29_i32 = arith.constant 29 : i32
    %209 = tpu.dynamic_rotate %2 by %c29_i32 dim 2 : vector<1x1x256xf32>, i32 -> vector<1x1x256xf32>
    %210 = arith.andi %23, %102 : vector<1x1x256xi1>
    %cst_44 = arith.constant 0.000000e+00 : f32
    %211 = vector.broadcast %cst_44 : f32 to vector<1x1x256xf32>
    %212 = arith.select %210, %209, %211 : vector<1x1x256xi1>, vector<1x1x256xf32>
    %213 = vector.broadcast %208 : f32 to vector<1x1x256xf32>
    %214 = arith.mulf %213, %212 : vector<1x1x256xf32>
    %215 = arith.addf %207, %214 : vector<1x1x256xf32>
    %c14 = arith.constant 14 : index
    %216 = memref.load %arg1[%c14] : memref<49xf32, #tpu.memory_space<smem>>
    %c19_i32 = arith.constant 19 : i32
    %217 = tpu.dynamic_rotate %2 by %c19_i32 dim 2 : vector<1x1x256xf32>, i32 -> vector<1x1x256xf32>
    %218 = arith.andi %37, %18 : vector<1x1x256xi1>
    %cst_45 = arith.constant 0.000000e+00 : f32
    %219 = vector.broadcast %cst_45 : f32 to vector<1x1x256xf32>
    %220 = arith.select %218, %217, %219 : vector<1x1x256xi1>, vector<1x1x256xf32>
    %221 = vector.broadcast %216 : f32 to vector<1x1x256xf32>
    %222 = arith.mulf %221, %220 : vector<1x1x256xf32>
    %223 = arith.addf %215, %222 : vector<1x1x256xf32>
    %c15 = arith.constant 15 : index
    %224 = memref.load %arg1[%c15] : memref<49xf32, #tpu.memory_space<smem>>
    %c18_i32 = arith.constant 18 : i32
    %225 = tpu.dynamic_rotate %2 by %c18_i32 dim 2 : vector<1x1x256xf32>, i32 -> vector<1x1x256xf32>
    %226 = arith.andi %37, %32 : vector<1x1x256xi1>
    %cst_46 = arith.constant 0.000000e+00 : f32
    %227 = vector.broadcast %cst_46 : f32 to vector<1x1x256xf32>
    %228 = arith.select %226, %225, %227 : vector<1x1x256xi1>, vector<1x1x256xf32>
    %229 = vector.broadcast %224 : f32 to vector<1x1x256xf32>
    %230 = arith.mulf %229, %228 : vector<1x1x256xf32>
    %231 = arith.addf %223, %230 : vector<1x1x256xf32>
    %c16 = arith.constant 16 : index
    %232 = memref.load %arg1[%c16] : memref<49xf32, #tpu.memory_space<smem>>
    %c17_i32 = arith.constant 17 : i32
    %233 = tpu.dynamic_rotate %2 by %c17_i32 dim 2 : vector<1x1x256xf32>, i32 -> vector<1x1x256xf32>
    %234 = arith.andi %37, %46 : vector<1x1x256xi1>
    %cst_47 = arith.constant 0.000000e+00 : f32
    %235 = vector.broadcast %cst_47 : f32 to vector<1x1x256xf32>
    %236 = arith.select %234, %233, %235 : vector<1x1x256xi1>, vector<1x1x256xf32>
    %237 = vector.broadcast %232 : f32 to vector<1x1x256xf32>
    %238 = arith.mulf %237, %236 : vector<1x1x256xf32>
    %239 = arith.addf %231, %238 : vector<1x1x256xf32>
    %c17 = arith.constant 17 : index
    %240 = memref.load %arg1[%c17] : memref<49xf32, #tpu.memory_space<smem>>
    %c16_i32_48 = arith.constant 16 : i32
    %241 = tpu.dynamic_rotate %2 by %c16_i32_48 dim 2 : vector<1x1x256xf32>, i32 -> vector<1x1x256xf32>
    %242 = arith.andi %37, %60 : vector<1x1x256xi1>
    %cst_49 = arith.constant 0.000000e+00 : f32
    %243 = vector.broadcast %cst_49 : f32 to vector<1x1x256xf32>
    %244 = arith.select %242, %241, %243 : vector<1x1x256xi1>, vector<1x1x256xf32>
    %245 = vector.broadcast %240 : f32 to vector<1x1x256xf32>
    %246 = arith.mulf %245, %244 : vector<1x1x256xf32>
    %247 = arith.addf %239, %246 : vector<1x1x256xf32>
    %c18 = arith.constant 18 : index
    %248 = memref.load %arg1[%c18] : memref<49xf32, #tpu.memory_space<smem>>
    %c15_i32 = arith.constant 15 : i32
    %249 = tpu.dynamic_rotate %2 by %c15_i32 dim 2 : vector<1x1x256xf32>, i32 -> vector<1x1x256xf32>
    %250 = arith.andi %37, %74 : vector<1x1x256xi1>
    %cst_50 = arith.constant 0.000000e+00 : f32
    %251 = vector.broadcast %cst_50 : f32 to vector<1x1x256xf32>
    %252 = arith.select %250, %249, %251 : vector<1x1x256xi1>, vector<1x1x256xf32>
    %253 = vector.broadcast %248 : f32 to vector<1x1x256xf32>
    %254 = arith.mulf %253, %252 : vector<1x1x256xf32>
    %255 = arith.addf %247, %254 : vector<1x1x256xf32>
    %c19 = arith.constant 19 : index
    %256 = memref.load %arg1[%c19] : memref<49xf32, #tpu.memory_space<smem>>
    %c14_i32 = arith.constant 14 : i32
    %257 = tpu.dynamic_rotate %2 by %c14_i32 dim 2 : vector<1x1x256xf32>, i32 -> vector<1x1x256xf32>
    %258 = arith.andi %37, %88 : vector<1x1x256xi1>
    %cst_51 = arith.constant 0.000000e+00 : f32
    %259 = vector.broadcast %cst_51 : f32 to vector<1x1x256xf32>
    %260 = arith.select %258, %257, %259 : vector<1x1x256xi1>, vector<1x1x256xf32>
    %261 = vector.broadcast %256 : f32 to vector<1x1x256xf32>
    %262 = arith.mulf %261, %260 : vector<1x1x256xf32>
    %263 = arith.addf %255, %262 : vector<1x1x256xf32>
    %c20 = arith.constant 20 : index
    %264 = memref.load %arg1[%c20] : memref<49xf32, #tpu.memory_space<smem>>
    %c13_i32 = arith.constant 13 : i32
    %265 = tpu.dynamic_rotate %2 by %c13_i32 dim 2 : vector<1x1x256xf32>, i32 -> vector<1x1x256xf32>
    %266 = arith.andi %37, %102 : vector<1x1x256xi1>
    %cst_52 = arith.constant 0.000000e+00 : f32
    %267 = vector.broadcast %cst_52 : f32 to vector<1x1x256xf32>
    %268 = arith.select %266, %265, %267 : vector<1x1x256xi1>, vector<1x1x256xf32>
    %269 = vector.broadcast %264 : f32 to vector<1x1x256xf32>
    %270 = arith.mulf %269, %268 : vector<1x1x256xf32>
    %271 = arith.addf %263, %270 : vector<1x1x256xf32>
    %c21 = arith.constant 21 : index
    %272 = memref.load %arg1[%c21] : memref<49xf32, #tpu.memory_space<smem>>
    %c3_i32_53 = arith.constant 3 : i32
    %273 = tpu.dynamic_rotate %2 by %c3_i32_53 dim 2 : vector<1x1x256xf32>, i32 -> vector<1x1x256xf32>
    %274 = arith.andi %51, %18 : vector<1x1x256xi1>
    %cst_54 = arith.constant 0.000000e+00 : f32
    %275 = vector.broadcast %cst_54 : f32 to vector<1x1x256xf32>
    %276 = arith.select %274, %273, %275 : vector<1x1x256xi1>, vector<1x1x256xf32>
    %277 = vector.broadcast %272 : f32 to vector<1x1x256xf32>
    %278 = arith.mulf %277, %276 : vector<1x1x256xf32>
    %279 = arith.addf %271, %278 : vector<1x1x256xf32>
    %c22 = arith.constant 22 : index
    %280 = memref.load %arg1[%c22] : memref<49xf32, #tpu.memory_space<smem>>
    %c2_i32_55 = arith.constant 2 : i32
    %281 = tpu.dynamic_rotate %2 by %c2_i32_55 dim 2 : vector<1x1x256xf32>, i32 -> vector<1x1x256xf32>
    %282 = arith.andi %51, %32 : vector<1x1x256xi1>
    %cst_56 = arith.constant 0.000000e+00 : f32
    %283 = vector.broadcast %cst_56 : f32 to vector<1x1x256xf32>
    %284 = arith.select %282, %281, %283 : vector<1x1x256xi1>, vector<1x1x256xf32>
    %285 = vector.broadcast %280 : f32 to vector<1x1x256xf32>
    %286 = arith.mulf %285, %284 : vector<1x1x256xf32>
    %287 = arith.addf %279, %286 : vector<1x1x256xf32>
    %c23 = arith.constant 23 : index
    %288 = memref.load %arg1[%c23] : memref<49xf32, #tpu.memory_space<smem>>
    %c1_i32_57 = arith.constant 1 : i32
    %289 = tpu.dynamic_rotate %2 by %c1_i32_57 dim 2 : vector<1x1x256xf32>, i32 -> vector<1x1x256xf32>
    %290 = arith.andi %51, %46 : vector<1x1x256xi1>
    %cst_58 = arith.constant 0.000000e+00 : f32
    %291 = vector.broadcast %cst_58 : f32 to vector<1x1x256xf32>
    %292 = arith.select %290, %289, %291 : vector<1x1x256xi1>, vector<1x1x256xf32>
    %293 = vector.broadcast %288 : f32 to vector<1x1x256xf32>
    %294 = arith.mulf %293, %292 : vector<1x1x256xf32>
    %295 = arith.addf %287, %294 : vector<1x1x256xf32>
    %c24 = arith.constant 24 : index
    %296 = memref.load %arg1[%c24] : memref<49xf32, #tpu.memory_space<smem>>
    %297 = vector.broadcast %296 : f32 to vector<1x1x256xf32>
    %298 = arith.mulf %297, %2 : vector<1x1x256xf32>
    %299 = arith.addf %295, %298 : vector<1x1x256xf32>
    %c25 = arith.constant 25 : index
    %300 = memref.load %arg1[%c25] : memref<49xf32, #tpu.memory_space<smem>>
    %c255_i32 = arith.constant 255 : i32
    %301 = tpu.dynamic_rotate %2 by %c255_i32 dim 2 : vector<1x1x256xf32>, i32 -> vector<1x1x256xf32>
    %302 = arith.andi %51, %74 : vector<1x1x256xi1>
    %cst_59 = arith.constant 0.000000e+00 : f32
    %303 = vector.broadcast %cst_59 : f32 to vector<1x1x256xf32>
    %304 = arith.select %302, %301, %303 : vector<1x1x256xi1>, vector<1x1x256xf32>
    %305 = vector.broadcast %300 : f32 to vector<1x1x256xf32>
    %306 = arith.mulf %305, %304 : vector<1x1x256xf32>
    %307 = arith.addf %299, %306 : vector<1x1x256xf32>
    %c26 = arith.constant 26 : index
    %308 = memref.load %arg1[%c26] : memref<49xf32, #tpu.memory_space<smem>>
    %c254_i32 = arith.constant 254 : i32
    %309 = tpu.dynamic_rotate %2 by %c254_i32 dim 2 : vector<1x1x256xf32>, i32 -> vector<1x1x256xf32>
    %310 = arith.andi %51, %88 : vector<1x1x256xi1>
    %cst_60 = arith.constant 0.000000e+00 : f32
    %311 = vector.broadcast %cst_60 : f32 to vector<1x1x256xf32>
    %312 = arith.select %310, %309, %311 : vector<1x1x256xi1>, vector<1x1x256xf32>
    %313 = vector.broadcast %308 : f32 to vector<1x1x256xf32>
    %314 = arith.mulf %313, %312 : vector<1x1x256xf32>
    %315 = arith.addf %307, %314 : vector<1x1x256xf32>
    %c27 = arith.constant 27 : index
    %316 = memref.load %arg1[%c27] : memref<49xf32, #tpu.memory_space<smem>>
    %c253_i32 = arith.constant 253 : i32
    %317 = tpu.dynamic_rotate %2 by %c253_i32 dim 2 : vector<1x1x256xf32>, i32 -> vector<1x1x256xf32>
    %318 = arith.andi %51, %102 : vector<1x1x256xi1>
    %cst_61 = arith.constant 0.000000e+00 : f32
    %319 = vector.broadcast %cst_61 : f32 to vector<1x1x256xf32>
    %320 = arith.select %318, %317, %319 : vector<1x1x256xi1>, vector<1x1x256xf32>
    %321 = vector.broadcast %316 : f32 to vector<1x1x256xf32>
    %322 = arith.mulf %321, %320 : vector<1x1x256xf32>
    %323 = arith.addf %315, %322 : vector<1x1x256xf32>
    %c28 = arith.constant 28 : index
    %324 = memref.load %arg1[%c28] : memref<49xf32, #tpu.memory_space<smem>>
    %c243_i32 = arith.constant 243 : i32
    %325 = tpu.dynamic_rotate %2 by %c243_i32 dim 2 : vector<1x1x256xf32>, i32 -> vector<1x1x256xf32>
    %326 = arith.andi %65, %18 : vector<1x1x256xi1>
    %cst_62 = arith.constant 0.000000e+00 : f32
    %327 = vector.broadcast %cst_62 : f32 to vector<1x1x256xf32>
    %328 = arith.select %326, %325, %327 : vector<1x1x256xi1>, vector<1x1x256xf32>
    %329 = vector.broadcast %324 : f32 to vector<1x1x256xf32>
    %330 = arith.mulf %329, %328 : vector<1x1x256xf32>
    %331 = arith.addf %323, %330 : vector<1x1x256xf32>
    %c29 = arith.constant 29 : index
    %332 = memref.load %arg1[%c29] : memref<49xf32, #tpu.memory_space<smem>>
    %c242_i32 = arith.constant 242 : i32
    %333 = tpu.dynamic_rotate %2 by %c242_i32 dim 2 : vector<1x1x256xf32>, i32 -> vector<1x1x256xf32>
    %334 = arith.andi %65, %32 : vector<1x1x256xi1>
    %cst_63 = arith.constant 0.000000e+00 : f32
    %335 = vector.broadcast %cst_63 : f32 to vector<1x1x256xf32>
    %336 = arith.select %334, %333, %335 : vector<1x1x256xi1>, vector<1x1x256xf32>
    %337 = vector.broadcast %332 : f32 to vector<1x1x256xf32>
    %338 = arith.mulf %337, %336 : vector<1x1x256xf32>
    %339 = arith.addf %331, %338 : vector<1x1x256xf32>
    %c30 = arith.constant 30 : index
    %340 = memref.load %arg1[%c30] : memref<49xf32, #tpu.memory_space<smem>>
    %c241_i32 = arith.constant 241 : i32
    %341 = tpu.dynamic_rotate %2 by %c241_i32 dim 2 : vector<1x1x256xf32>, i32 -> vector<1x1x256xf32>
    %342 = arith.andi %65, %46 : vector<1x1x256xi1>
    %cst_64 = arith.constant 0.000000e+00 : f32
    %343 = vector.broadcast %cst_64 : f32 to vector<1x1x256xf32>
    %344 = arith.select %342, %341, %343 : vector<1x1x256xi1>, vector<1x1x256xf32>
    %345 = vector.broadcast %340 : f32 to vector<1x1x256xf32>
    %346 = arith.mulf %345, %344 : vector<1x1x256xf32>
    %347 = arith.addf %339, %346 : vector<1x1x256xf32>
    %c31 = arith.constant 31 : index
    %348 = memref.load %arg1[%c31] : memref<49xf32, #tpu.memory_space<smem>>
    %c240_i32_65 = arith.constant 240 : i32
    %349 = tpu.dynamic_rotate %2 by %c240_i32_65 dim 2 : vector<1x1x256xf32>, i32 -> vector<1x1x256xf32>
    %350 = arith.andi %65, %60 : vector<1x1x256xi1>
    %cst_66 = arith.constant 0.000000e+00 : f32
    %351 = vector.broadcast %cst_66 : f32 to vector<1x1x256xf32>
    %352 = arith.select %350, %349, %351 : vector<1x1x256xi1>, vector<1x1x256xf32>
    %353 = vector.broadcast %348 : f32 to vector<1x1x256xf32>
    %354 = arith.mulf %353, %352 : vector<1x1x256xf32>
    %355 = arith.addf %347, %354 : vector<1x1x256xf32>
    %c32 = arith.constant 32 : index
    %356 = memref.load %arg1[%c32] : memref<49xf32, #tpu.memory_space<smem>>
    %c239_i32 = arith.constant 239 : i32
    %357 = tpu.dynamic_rotate %2 by %c239_i32 dim 2 : vector<1x1x256xf32>, i32 -> vector<1x1x256xf32>
    %358 = arith.andi %65, %74 : vector<1x1x256xi1>
    %cst_67 = arith.constant 0.000000e+00 : f32
    %359 = vector.broadcast %cst_67 : f32 to vector<1x1x256xf32>
    %360 = arith.select %358, %357, %359 : vector<1x1x256xi1>, vector<1x1x256xf32>
    %361 = vector.broadcast %356 : f32 to vector<1x1x256xf32>
    %362 = arith.mulf %361, %360 : vector<1x1x256xf32>
    %363 = arith.addf %355, %362 : vector<1x1x256xf32>
    %c33 = arith.constant 33 : index
    %364 = memref.load %arg1[%c33] : memref<49xf32, #tpu.memory_space<smem>>
    %c238_i32 = arith.constant 238 : i32
    %365 = tpu.dynamic_rotate %2 by %c238_i32 dim 2 : vector<1x1x256xf32>, i32 -> vector<1x1x256xf32>
    %366 = arith.andi %65, %88 : vector<1x1x256xi1>
    %cst_68 = arith.constant 0.000000e+00 : f32
    %367 = vector.broadcast %cst_68 : f32 to vector<1x1x256xf32>
    %368 = arith.select %366, %365, %367 : vector<1x1x256xi1>, vector<1x1x256xf32>
    %369 = vector.broadcast %364 : f32 to vector<1x1x256xf32>
    %370 = arith.mulf %369, %368 : vector<1x1x256xf32>
    %371 = arith.addf %363, %370 : vector<1x1x256xf32>
    %c34 = arith.constant 34 : index
    %372 = memref.load %arg1[%c34] : memref<49xf32, #tpu.memory_space<smem>>
    %c237_i32 = arith.constant 237 : i32
    %373 = tpu.dynamic_rotate %2 by %c237_i32 dim 2 : vector<1x1x256xf32>, i32 -> vector<1x1x256xf32>
    %374 = arith.andi %65, %102 : vector<1x1x256xi1>
    %cst_69 = arith.constant 0.000000e+00 : f32
    %375 = vector.broadcast %cst_69 : f32 to vector<1x1x256xf32>
    %376 = arith.select %374, %373, %375 : vector<1x1x256xi1>, vector<1x1x256xf32>
    %377 = vector.broadcast %372 : f32 to vector<1x1x256xf32>
    %378 = arith.mulf %377, %376 : vector<1x1x256xf32>
    %379 = arith.addf %371, %378 : vector<1x1x256xf32>
    %c35 = arith.constant 35 : index
    %380 = memref.load %arg1[%c35] : memref<49xf32, #tpu.memory_space<smem>>
    %c227_i32 = arith.constant 227 : i32
    %381 = tpu.dynamic_rotate %2 by %c227_i32 dim 2 : vector<1x1x256xf32>, i32 -> vector<1x1x256xf32>
    %382 = arith.andi %79, %18 : vector<1x1x256xi1>
    %cst_70 = arith.constant 0.000000e+00 : f32
    %383 = vector.broadcast %cst_70 : f32 to vector<1x1x256xf32>
    %384 = arith.select %382, %381, %383 : vector<1x1x256xi1>, vector<1x1x256xf32>
    %385 = vector.broadcast %380 : f32 to vector<1x1x256xf32>
    %386 = arith.mulf %385, %384 : vector<1x1x256xf32>
    %387 = arith.addf %379, %386 : vector<1x1x256xf32>
    %c36 = arith.constant 36 : index
    %388 = memref.load %arg1[%c36] : memref<49xf32, #tpu.memory_space<smem>>
    %c226_i32 = arith.constant 226 : i32
    %389 = tpu.dynamic_rotate %2 by %c226_i32 dim 2 : vector<1x1x256xf32>, i32 -> vector<1x1x256xf32>
    %390 = arith.andi %79, %32 : vector<1x1x256xi1>
    %cst_71 = arith.constant 0.000000e+00 : f32
    %391 = vector.broadcast %cst_71 : f32 to vector<1x1x256xf32>
    %392 = arith.select %390, %389, %391 : vector<1x1x256xi1>, vector<1x1x256xf32>
    %393 = vector.broadcast %388 : f32 to vector<1x1x256xf32>
    %394 = arith.mulf %393, %392 : vector<1x1x256xf32>
    %395 = arith.addf %387, %394 : vector<1x1x256xf32>
    %c37 = arith.constant 37 : index
    %396 = memref.load %arg1[%c37] : memref<49xf32, #tpu.memory_space<smem>>
    %c225_i32 = arith.constant 225 : i32
    %397 = tpu.dynamic_rotate %2 by %c225_i32 dim 2 : vector<1x1x256xf32>, i32 -> vector<1x1x256xf32>
    %398 = arith.andi %79, %46 : vector<1x1x256xi1>
    %cst_72 = arith.constant 0.000000e+00 : f32
    %399 = vector.broadcast %cst_72 : f32 to vector<1x1x256xf32>
    %400 = arith.select %398, %397, %399 : vector<1x1x256xi1>, vector<1x1x256xf32>
    %401 = vector.broadcast %396 : f32 to vector<1x1x256xf32>
    %402 = arith.mulf %401, %400 : vector<1x1x256xf32>
    %403 = arith.addf %395, %402 : vector<1x1x256xf32>
    %c38 = arith.constant 38 : index
    %404 = memref.load %arg1[%c38] : memref<49xf32, #tpu.memory_space<smem>>
    %c224_i32_73 = arith.constant 224 : i32
    %405 = tpu.dynamic_rotate %2 by %c224_i32_73 dim 2 : vector<1x1x256xf32>, i32 -> vector<1x1x256xf32>
    %406 = arith.andi %79, %60 : vector<1x1x256xi1>
    %cst_74 = arith.constant 0.000000e+00 : f32
    %407 = vector.broadcast %cst_74 : f32 to vector<1x1x256xf32>
    %408 = arith.select %406, %405, %407 : vector<1x1x256xi1>, vector<1x1x256xf32>
    %409 = vector.broadcast %404 : f32 to vector<1x1x256xf32>
    %410 = arith.mulf %409, %408 : vector<1x1x256xf32>
    %411 = arith.addf %403, %410 : vector<1x1x256xf32>
    %c39 = arith.constant 39 : index
    %412 = memref.load %arg1[%c39] : memref<49xf32, #tpu.memory_space<smem>>
    %c223_i32 = arith.constant 223 : i32
    %413 = tpu.dynamic_rotate %2 by %c223_i32 dim 2 : vector<1x1x256xf32>, i32 -> vector<1x1x256xf32>
    %414 = arith.andi %79, %74 : vector<1x1x256xi1>
    %cst_75 = arith.constant 0.000000e+00 : f32
    %415 = vector.broadcast %cst_75 : f32 to vector<1x1x256xf32>
    %416 = arith.select %414, %413, %415 : vector<1x1x256xi1>, vector<1x1x256xf32>
    %417 = vector.broadcast %412 : f32 to vector<1x1x256xf32>
    %418 = arith.mulf %417, %416 : vector<1x1x256xf32>
    %419 = arith.addf %411, %418 : vector<1x1x256xf32>
    %c40 = arith.constant 40 : index
    %420 = memref.load %arg1[%c40] : memref<49xf32, #tpu.memory_space<smem>>
    %c222_i32 = arith.constant 222 : i32
    %421 = tpu.dynamic_rotate %2 by %c222_i32 dim 2 : vector<1x1x256xf32>, i32 -> vector<1x1x256xf32>
    %422 = arith.andi %79, %88 : vector<1x1x256xi1>
    %cst_76 = arith.constant 0.000000e+00 : f32
    %423 = vector.broadcast %cst_76 : f32 to vector<1x1x256xf32>
    %424 = arith.select %422, %421, %423 : vector<1x1x256xi1>, vector<1x1x256xf32>
    %425 = vector.broadcast %420 : f32 to vector<1x1x256xf32>
    %426 = arith.mulf %425, %424 : vector<1x1x256xf32>
    %427 = arith.addf %419, %426 : vector<1x1x256xf32>
    %c41 = arith.constant 41 : index
    %428 = memref.load %arg1[%c41] : memref<49xf32, #tpu.memory_space<smem>>
    %c221_i32 = arith.constant 221 : i32
    %429 = tpu.dynamic_rotate %2 by %c221_i32 dim 2 : vector<1x1x256xf32>, i32 -> vector<1x1x256xf32>
    %430 = arith.andi %79, %102 : vector<1x1x256xi1>
    %cst_77 = arith.constant 0.000000e+00 : f32
    %431 = vector.broadcast %cst_77 : f32 to vector<1x1x256xf32>
    %432 = arith.select %430, %429, %431 : vector<1x1x256xi1>, vector<1x1x256xf32>
    %433 = vector.broadcast %428 : f32 to vector<1x1x256xf32>
    %434 = arith.mulf %433, %432 : vector<1x1x256xf32>
    %435 = arith.addf %427, %434 : vector<1x1x256xf32>
    %c42 = arith.constant 42 : index
    %436 = memref.load %arg1[%c42] : memref<49xf32, #tpu.memory_space<smem>>
    %c211_i32 = arith.constant 211 : i32
    %437 = tpu.dynamic_rotate %2 by %c211_i32 dim 2 : vector<1x1x256xf32>, i32 -> vector<1x1x256xf32>
    %438 = arith.andi %93, %18 : vector<1x1x256xi1>
    %cst_78 = arith.constant 0.000000e+00 : f32
    %439 = vector.broadcast %cst_78 : f32 to vector<1x1x256xf32>
    %440 = arith.select %438, %437, %439 : vector<1x1x256xi1>, vector<1x1x256xf32>
    %441 = vector.broadcast %436 : f32 to vector<1x1x256xf32>
    %442 = arith.mulf %441, %440 : vector<1x1x256xf32>
    %443 = arith.addf %435, %442 : vector<1x1x256xf32>
    %c43 = arith.constant 43 : index
    %444 = memref.load %arg1[%c43] : memref<49xf32, #tpu.memory_space<smem>>
    %c210_i32 = arith.constant 210 : i32
    %445 = tpu.dynamic_rotate %2 by %c210_i32 dim 2 : vector<1x1x256xf32>, i32 -> vector<1x1x256xf32>
    %446 = arith.andi %93, %32 : vector<1x1x256xi1>
    %cst_79 = arith.constant 0.000000e+00 : f32
    %447 = vector.broadcast %cst_79 : f32 to vector<1x1x256xf32>
    %448 = arith.select %446, %445, %447 : vector<1x1x256xi1>, vector<1x1x256xf32>
    %449 = vector.broadcast %444 : f32 to vector<1x1x256xf32>
    %450 = arith.mulf %449, %448 : vector<1x1x256xf32>
    %451 = arith.addf %443, %450 : vector<1x1x256xf32>
    %c44 = arith.constant 44 : index
    %452 = memref.load %arg1[%c44] : memref<49xf32, #tpu.memory_space<smem>>
    %c209_i32 = arith.constant 209 : i32
    %453 = tpu.dynamic_rotate %2 by %c209_i32 dim 2 : vector<1x1x256xf32>, i32 -> vector<1x1x256xf32>
    %454 = arith.andi %93, %46 : vector<1x1x256xi1>
    %cst_80 = arith.constant 0.000000e+00 : f32
    %455 = vector.broadcast %cst_80 : f32 to vector<1x1x256xf32>
    %456 = arith.select %454, %453, %455 : vector<1x1x256xi1>, vector<1x1x256xf32>
    %457 = vector.broadcast %452 : f32 to vector<1x1x256xf32>
    %458 = arith.mulf %457, %456 : vector<1x1x256xf32>
    %459 = arith.addf %451, %458 : vector<1x1x256xf32>
    %c45 = arith.constant 45 : index
    %460 = memref.load %arg1[%c45] : memref<49xf32, #tpu.memory_space<smem>>
    %c208_i32_81 = arith.constant 208 : i32
    %461 = tpu.dynamic_rotate %2 by %c208_i32_81 dim 2 : vector<1x1x256xf32>, i32 -> vector<1x1x256xf32>
    %462 = arith.andi %93, %60 : vector<1x1x256xi1>
    %cst_82 = arith.constant 0.000000e+00 : f32
    %463 = vector.broadcast %cst_82 : f32 to vector<1x1x256xf32>
    %464 = arith.select %462, %461, %463 : vector<1x1x256xi1>, vector<1x1x256xf32>
    %465 = vector.broadcast %460 : f32 to vector<1x1x256xf32>
    %466 = arith.mulf %465, %464 : vector<1x1x256xf32>
    %467 = arith.addf %459, %466 : vector<1x1x256xf32>
    %c46 = arith.constant 46 : index
    %468 = memref.load %arg1[%c46] : memref<49xf32, #tpu.memory_space<smem>>
    %c207_i32 = arith.constant 207 : i32
    %469 = tpu.dynamic_rotate %2 by %c207_i32 dim 2 : vector<1x1x256xf32>, i32 -> vector<1x1x256xf32>
    %470 = arith.andi %93, %74 : vector<1x1x256xi1>
    %cst_83 = arith.constant 0.000000e+00 : f32
    %471 = vector.broadcast %cst_83 : f32 to vector<1x1x256xf32>
    %472 = arith.select %470, %469, %471 : vector<1x1x256xi1>, vector<1x1x256xf32>
    %473 = vector.broadcast %468 : f32 to vector<1x1x256xf32>
    %474 = arith.mulf %473, %472 : vector<1x1x256xf32>
    %475 = arith.addf %467, %474 : vector<1x1x256xf32>
    %c47 = arith.constant 47 : index
    %476 = memref.load %arg1[%c47] : memref<49xf32, #tpu.memory_space<smem>>
    %c206_i32 = arith.constant 206 : i32
    %477 = tpu.dynamic_rotate %2 by %c206_i32 dim 2 : vector<1x1x256xf32>, i32 -> vector<1x1x256xf32>
    %478 = arith.andi %93, %88 : vector<1x1x256xi1>
    %cst_84 = arith.constant 0.000000e+00 : f32
    %479 = vector.broadcast %cst_84 : f32 to vector<1x1x256xf32>
    %480 = arith.select %478, %477, %479 : vector<1x1x256xi1>, vector<1x1x256xf32>
    %481 = vector.broadcast %476 : f32 to vector<1x1x256xf32>
    %482 = arith.mulf %481, %480 : vector<1x1x256xf32>
    %483 = arith.addf %475, %482 : vector<1x1x256xf32>
    %c48 = arith.constant 48 : index
    %484 = memref.load %arg1[%c48] : memref<49xf32, #tpu.memory_space<smem>>
    %c205_i32 = arith.constant 205 : i32
    %485 = tpu.dynamic_rotate %2 by %c205_i32 dim 2 : vector<1x1x256xf32>, i32 -> vector<1x1x256xf32>
    %486 = arith.andi %93, %102 : vector<1x1x256xi1>
    %cst_85 = arith.constant 0.000000e+00 : f32
    %487 = vector.broadcast %cst_85 : f32 to vector<1x1x256xf32>
    %488 = arith.select %486, %485, %487 : vector<1x1x256xi1>, vector<1x1x256xf32>
    %489 = vector.broadcast %484 : f32 to vector<1x1x256xf32>
    %490 = arith.mulf %489, %488 : vector<1x1x256xf32>
    %491 = arith.addf %483, %490 : vector<1x1x256xf32>
    %492 = arith.negf %491 : vector<1x1x256xf32>
    %493 = math.exp %492 : vector<1x1x256xf32>
    %cst_86 = arith.constant 1.000000e+00 : f32
    %494 = vector.broadcast %cst_86 : f32 to vector<1x1x256xf32>
    %495 = arith.addf %494, %493 : vector<1x1x256xf32>
    %496 = arith.divf %494, %495 : vector<1x1x256xf32>
    %c0_87 = arith.constant 0 : index
    %c0_88 = arith.constant 0 : index
    %c0_89 = arith.constant 0 : index
    %497 = vector.load %arg4[%c0_87, %c0_88, %c0_89] : memref<1x1x256xf32, #tpu.memory_space<vmem>>, vector<1x1x256xf32>
    tpu.vector_store %arg4[%c0_87, %c0_88, %c0_89], %496 {strides = array<i32>} : memref<1x1x256xf32, #tpu.memory_space<vmem>>, vector<1x1x256xf32>,
    return
  }
  func.func @transform_0(%arg0: i32) -> i32 {
    %c0_i32 = arith.constant 0 : i32
    %c0_i32_0 = arith.constant 0 : i32
    return %c0_i32 : i32
  }
  func.func @transform_1(%arg0: i32) -> (i32, i32, i32) {
    %c0_i32 = arith.constant 0 : i32
    %c0_i32_0 = arith.constant 0 : i32
    %c0_i32_1 = arith.constant 0 : i32
    %c0_i32_2 = arith.constant 0 : i32
    return %c0_i32, %c0_i32_0, %c0_i32_1 : i32, i32, i32
  }
  func.func @transform_2(%arg0: i32) -> (i32, i32, i32) {
    %c0_i32 = arith.constant 0 : i32
    %c0_i32_0 = arith.constant 0 : i32
    %c0_i32_1 = arith.constant 0 : i32
    return %arg0, %c0_i32, %c0_i32_0 : i32, i32, i32
  }
  func.func @transform_3(%arg0: i32) -> (i32, i32, i32) {
    %c0_i32 = arith.constant 0 : i32
    %c0_i32_0 = arith.constant 0 : i32
    %c0_i32_1 = arith.constant 0 : i32
    return %arg0, %c0_i32, %c0_i32_0 : i32, i32, i32
  }
}

</mosaic_0001>

<bundles_post_ra>
// kernel: tpu_custom_call.1
= control target key start
LH: loop header
LB: loop body
LE: loop exit
PB: predicated region body
PF: predicated region fallthrough
CT: control target
= control target key end

     0   :  { %8 = vsyncpa [#allocation5], 0  ;;  %s2941_s0 = inlined_call_operand.hbm [shape: f32[49], index: 0, kind: input, shape index: {}]   ;;  %s2942_s1 = inlined_call_operand.hbm [shape: s32[1,1,256], index: 1, kind: input, shape index: {}]   ;;  %s2943_s2 = inlined_call_operand.hbm [shape: f32[2,4,256], index: 2, kind: input, shape index: {}]   ;;  %s2944_s3 = inlined_call_operand.hbm [shape: f32[2,1,256], index: 3, kind: output, shape index: {}]  }
   0x1   :  { %9 = vsyncpa [#allocation3], 0 }
   0x2   :  { %10 = vsyncpa [#allocation8], 0 }
   0x3   :  { %12 = vsyncpa [#allocation8 + $0x1], 0 }
   0x4   :  { %13 = vsyncpa [#allocation4], 0 }
   0x5   :  { %15 = vsyncpa [#allocation4 + $0x1], 0  ;;  %s1743_s12 = smov 0   ;;  %s1745_s13 = smov 0  }
   0x6   :  { %s1747_s14 = smov 0   ;;  %s1749_s15 = smov 0  }
   0x7 LB: > { %s1764_s16 = sadd.s32 4294967295, %s1670_s15   ;;  %s1329_s17 = sadd.s32 4294967294, %s1670_s15   ;;  %s1670_s15 = sphi %s1749_s15, %s3115_s15   ;;  %s1666_s14 = sphi %s1747_s14, %s3114_s14   ;;  %s1662_s13 = sphi %s1745_s13, %s3113_s13   ;;  %s1658_s12 = sphi %s1743_s12, %s3112_s12  }
   0x8   : > { %p83_p0 = scmp.ne.s32.totalorder %s1662_s13, %s1658_s12  ;;  %p84_p1 = scmp.eq.s32.totalorder %s1764_s16, 0 }
   0x9   : > { %p107_p2 = scmp.eq.s32.totalorder %s1764_s16, 1  ;;  %p113_p3 = scmp.eq.s32.totalorder %s1329_s17, 1 }
   0xa   : > { %p1773_p4 = por %p84_p1, %p83_p0  ;;  %p1330_p5 = scmp.ge.s32.totalorder %s1670_s15, 1 }
   0xb   : > { %p1778_p6 = por %p113_p3, %p83_p0  ;;  %p120_p7 = scmp.lt.s32.totalorder %s1670_s15, 3 }
   0xc   : > { %s132_s22 = sshll.u32 %s2941_s0, 4  ;;  %s142_s26 = sshll.u32 %s2942_s1, 4  ;;  %s133_s22 = int_to_ptr.hbm [resolvable:$true] %s132_s22  ;;  %s143_s26 = int_to_ptr.hbm [resolvable:$true] %s142_s26 }
   0xd   : > { %p1786_p8 = pnand %p1330_p5, %p120_p7  ;;  %s1672_s27 = smov [#allocation6]  }
   0xe   : > { %s144_s28 = sshll.u32 %s1672_s27, 4  ;;  %s1673_s29 = smov [#allocation2]   ;;  %s145_s28 = int_to_ptr.vmem [resolvable:$true] %s144_s28 }
   0xf   : > { %p1409_p10 = pneg %p1786_p8  ;;  %s1799_s30 = sadd.s32 1, %s1670_s15  }
  0x10   : > { %s70_s4 = sadd.s32 1, %s1666_s14  ;;  %s67_s5 = ssub.s32 %s1670_s15, %s1799_s30 }
  0x11   : > { %p1410_p11 = pnand %p1409_p10, %p84_p1  ;;  %p77_p12 = scmp.ne.s32.totalorder %s1666_s14, %s1662_s13 }
  0x12   : > { %p68_p13 = scmp.eq.s32.totalorder %s67_s5, 0  ;;  %p78_p0 = scmp.eq.s32.totalorder %s1670_s15, 0 }
  0x13   : > { %1412 = dma.hbm_to_smem (!%p1410_p11), %s133_s22, 16, %s1673_s29, [#allocation5]  }
  0x14   : > { %1415 = dma.hbm_to_vmem [thread:$0]  (!%p1410_p11), %s143_s26, 32, %s145_s28, [#allocation3]  }
  0x15   : > { %p1809_p3 = por %p107_p2, %p77_p12  ;;  %p1426_p5 = scmp.lt.s32.totalorder %s1670_s15, 2 }
  0x16   : > { %s1815_s7 = scalar_select %p68_p13, %s1666_s14, %s70_s4  }
  0x17   : > { %p79_p7 = por %p78_p0, %p77_p12  ;;  %s155_s8 = sand.u32 1, %s1666_s14  }
  0x18   : > { %s1334_s9 = sshll.u32 %s155_s8, 3  ;;  %s1396_s10 = sshll.u32 %s1670_s15, 3 }
  0x19   : > { %s164_s20 = scalar_lea.hbm %s2943_s2, %s1396_s10  ;;  %s159_s21 = scalar_lea.vmem [#allocation7], %s1334_s9 }
  0x1a   : > { %s168_s22 = sshll.u32 %s159_s21, 4  ;;  %s166_s24 = sshll.u32 %s164_s20, 4  ;;  %s169_s22 = int_to_ptr.vmem [resolvable:$true] %s168_s22  ;;  %s167_s24 = int_to_ptr.hbm [resolvable:$true] %s166_s24 }
  0x1b   : > { %p1822_p2 = pnand %p1426_p5, %p79_p7  ;;  %s156_s26 = scalar_lea.sflag [#allocation8], %s155_s8 }
  0x1c   : > { %s1566_s27 = sshra.s32 %s167_s24, 4  ;;  %s1573_s5 = scalar_lea.hbm %s2943_s2, 16  ;;  %s1567_s27 = int_to_ptr.hbm [resolvable:$true] %s1566_s27 }
  0x1d   : > { %s1568_s28 = scalar_lea.hbm %s1567_s27, 8  ;;  %p1570_p11 = pneg %p1822_p2 }
  0x1e   : > { %p1569_p10 = scmp.ne.s32.totalorder %s1567_s27, %s1568_s28  ;;  %p1574_p0 = scmp.lt.s32.totalorder %s1567_s27, %s2943_s2 }
  0x1f   : > { %p1575_p5 = scmp.lt.s32.totalorder %s1573_s5, %s1568_s28 }
  0x20   : > { %p1571_p12 = pnand %p1570_p11, %p1569_p10 }
  0x21   : > { %p1576_p7 = por %p1575_p5, %p1574_p0 }
  0x22   : > { %p1572_p13 = pneg %p1571_p12 }
  0x24   : > { %p1577_p9 = pnand %p1576_p7, %p1572_p13 }
  0x26   : > { %1580 = shalt.err (!%p1577_p9)
}
  0x27   : > { %1419 = dma.hbm_to_vmem [thread:$0]  (!%p1822_p2), %s167_s24, 128, %s169_s22, %s156_s26  }
  0x28   : > { %177 = sbr.rel (%p1786_p8) target bundleno = 482 (0x1e2), region = 32 }
  0x2d   : > { %1641 = dma.done.wait (%p84_p1), [#allocation5], 16  }
  0x2e   : > { %1643 = vsyncadd (%p84_p1), [#allocation5], 4294967280 }
  0x2f   : > { %1645 = dma.done.wait (%p84_p1), [#allocation3], 32  }
  0x30   : > { %1647 = vsyncadd (%p84_p1), [#allocation3], 4294967264  ;;  %s1847_s8 = sand.u32 1, %s1662_s13  }
  0x31   : > { %s1340_s23 = sshll.u32 %s1847_s8, 3  ;;  %s190_s11 = scalar_lea.sflag [#allocation8], %s1847_s8 }
  0x32   : > { %s193_s17 = scalar_lea.vmem [#allocation7], %s1340_s23 }
  0x33   : > { %1649 = dma.done.wait (%p1773_p4), %s190_s11, 128  }
  0x34   : > { %1651 = vsyncadd (%p1773_p4), %s190_s11, 4294967168 }
  0x35   : > { %199 = sfence }
  0x36   : > { %v218_v0 = vld [vmem:[%s193_s17] sm:$0xff]  ;;  %vm225_vm0 = vcmask 1043456   ;;  %s1674_s18 = smov 50   ;;  %s1675_s20 = smov 51   ;;  %v240_v17 = vlaneseq  ;;  %v1898_v20 = vld [vmem:[#allocation6] sm:$0x3] }
  0x37   : > { %220 = vst [vmem:[#allocation1] ss:$2 sm:$0xff] %v218_v0  ;;  %s1676_s21 = smov 49   ;;  %s1677_s22 = smov 48   ;;  %v270_v21 = vadd.s32 4294967295, %v1898_v20  ;;  %v260_v25 = vadd.s32 4294967294, %v1898_v20 }
  0x38   : > { %s1678_s24 = smov 47   ;;  %s1679_s25 = smov 46   ;;  %v1896_v19 = vand.u32 127, %v240_v17  ;;  %v250_v26 = vadd.s32 4294967293, %v1898_v20  ;;  %v1695_v28 = vmov 0   ;;  %vm280_vm11 = vcmp.ge.s32.totalorder %v1898_v20, 0 }
  0x39   : > { %s1680_s26 = smov 45   ;;  %s1681_s27 = smov 35   ;;  %vm271_vm2 = vcmp.ge.s32.totalorder %v270_v21, 0  ;;  %vm272_vm3 = vcmp.lt.s32.totalorder %v270_v21, 16  ;;  %vm261_vm4 = vcmp.ge.s32.totalorder %v260_v25, 0  ;;  %vm262_vm5 = vcmp.lt.s32.totalorder %v260_v25, 16 }
  0x3a   : > { %s1682_s28 = smov 34   ;;  %s1683_s29 = smov 33   ;;  %vm362_vm1 = vcmp.lt.s32.totalorder %v1896_v19, 49  ;;  %vm273_vm6 = vmand %vm271_vm2, %vm272_vm3  ;;  %vm251_vm7 = vcmp.ge.s32.totalorder %v250_v26, 0  ;;  %vm252_vm8 = vcmp.lt.s32.totalorder %v250_v26, 16  ;;  %vm281_vm12 = vcmp.lt.s32.totalorder %v1898_v20, 16 }
  0x3b   : > { %s1684_s4 = smov 32   ;;  %s1685_s5 = smov 31   ;;  %vm263_vm9 = vmand %vm261_vm4, %vm262_vm5  ;;  %v365_v29 = vsel %vm273_vm6, 1, %v1695_v28  ;;  %v289_v33 = vadd.s32 1, %v1898_v20  ;;  %vm244_vm13 = vcmp.ge.s32.totalorder %v1896_v19, 48  ;;  %v2979_v39 = vmov 0 }
  0x3c   : > { %s1686_s9 = smov 30   ;;  %s1687_s10 = smov 29   ;;  %vm253_vm10 = vmand %vm251_vm7, %vm252_vm8  ;;  %v343_v30 = vsel %vm263_vm9, 1, %v1695_v28  ;;  %v366_v31 = vperm.slane %v365_v29, 0  ;;  %v367_v38 = vperm.slane %v365_v29, 1  ;;  %v2981_v43 = vmov 0 }
  0x3d   : > { %s1688_s23 = smov 19   ;;  %s1689_s11 = smov 18   ;;  %v321_v32 = vsel %vm253_vm10, 1, %v1695_v28  ;;  %v344_v34 = vperm.slane %v343_v30, 0  ;;  %vm282_vm15 = vmand %vm280_vm11, %vm281_vm12  ;;  %v345_v41 = vperm.slane %v343_v30, 1  ;;  %v299_v44 = vadd.s32 2, %v1898_v20 }
  0x3e   : > { %v221_v1 = vld.sshfl [vmem:[#allocation1] sm:$0xff pattern:$0x75316420]  ;;  %v222_v2 = vld.sshfl [vmem:[#allocation1 + $0x8] sm:$0xff pattern:$0x75316420] }
  0x3f   : > { %v226_v3 = vsel %vm225_vm0, %v221_v1, -inf  ;;  %v233_v4 = vsel %vm225_vm0, %v222_v2, -inf  ;;  %s1690_s17 = smov 17   ;;  %v322_v37 = vperm.slane %v321_v32, 0  ;;  %vm1932_vm14 = vcmp.ne.s32.totalorder %v366_v31, 0 }
  0x40   : > { %v227_v5 = vrot.slane %v226_v3, 4  ;;  %v234_v6 = vrot.slane %v233_v4, 4  ;;  %v2980_v39 = vsel %vm1932_vm14, 4294967295, %v2979_v39  ;;  %v323_v42 = vperm.slane %v321_v32, 1  ;;  %vm1947_vm3 = vmand %vm244_vm13, %vm1932_vm14 }
  0x41   : > { %vm290_vm0 = vcmp.ge.s32.totalorder %v289_v33, 0  ;;  %vm1938_vm2 = vcmp.ne.s32.totalorder %v344_v34, 0  ;;  %vm1951_vm4 = vcmp.ne.s32.totalorder %v322_v37, 0  ;;  %v387_v47 = vsel %vm282_vm15, 1, %v1695_v28 }
  0x42   : > { %v228_v7 = vmax.f32 %v226_v3, %v227_v5  ;;  %v235_v8 = vmax.f32 %v233_v4, %v234_v6  ;;  %v2982_v43 = vsel %vm1938_vm2, 4294967295, %v2981_v43  ;;  %vm1956_vm5 = vcmp.ne.s32.totalorder %v367_v38, 0  ;;  %vm1977_vm9 = vmand %vm244_vm13, %vm1938_vm2 }
  0x43   : > { %v2987_v48 = vmov 0  ;;  %vm340_vm6 = vcmp.lt.s32.totalorder %v1896_v19, 50  ;;  %vm1969_vm8 = vcmp.ne.s32.totalorder %v345_v41, 0  ;;  %v2991_v52 = vmov 0  ;;  %vm1991_vm12 = vmand %vm244_vm13, %vm1951_vm4 }
  0x44   : > { %v229_v9 = vrot.slane %v228_v7, 2  ;;  %v236_v10 = vrot.slane %v235_v8, 2  ;;  %v2988_v48 = vsel %vm1956_vm5, 4294967295, %v2987_v48  ;;  %v2992_v52 = vsel %vm1969_vm8, 4294967295, %v2991_v52 }
  0x45   : > { %vm318_vm10 = vcmp.lt.s32.totalorder %v1896_v19, 51  ;;  %vm1982_vm11 = vcmp.ne.s32.totalorder %v323_v42, 0  ;;  %v388_v57 = vperm.slane %v387_v47, 0  ;;  %v389_v58 = vperm.slane %v387_v47, 1 }
  0x46   : > { %v230_v11 = vmax.f32 %v228_v7, %v229_v9  ;;  %v237_v13 = vmax.f32 %v235_v8, %v236_v10  ;;  %vm300_vm15 = vcmp.ge.s32.totalorder %v299_v44, 0  ;;  %v309_v0 = vadd.s32 3, %v1898_v20 }
  0x47   : > { %v3005_v47 = vmov 0 }
  0x48   : > { %v231_v12 = vrot.slane %v230_v11, 1  ;;  %v238_v15 = vrot.slane %v237_v13, 1 }
  0x4a   : > { %v1855_v14 = vmax.f32 %v230_v11, %v231_v12  ;;  %v1860_v16 = vmax.f32 %v237_v13, %v238_v15 }
  0x4c   : > { %336 = vrot.lane.b32.xlu1 %v1855_v14, %s1674_s18  ;;  %314 = vrot.lane.b32.xlu0 %v1855_v14, %s1675_s20 }
  0x4d   : > { %358 = vrot.lane.b32.xlu2 %v1855_v14, %s1676_s21 }
  0x54   : > { %338 = vrot.lane.b32.xlu1 %v1860_v16, %s1674_s18  ;;  %316 = vrot.lane.b32.xlu0 %v1860_v16, %s1675_s20  ;;  %s1691_s18 = smov 16   ;;  %s1692_s20 = smov 15  }
  0x55   : > { %360 = vrot.lane.b32.xlu2 %v1860_v16, %s1676_s21  ;;  %s1693_s21 = smov 14  }
  0x5c   : > { %382 = vrot.lane.b32.xlu1 %v1860_v16, %s1677_s22  ;;  %380 = vrot.lane.b32.xlu0 %v1855_v14, %s1677_s22  ;;  %s1694_s22 = smov 13  }
  0x5d   : > { %402 = vrot.lane.b32.xlu2 %v1855_v14, %s1678_s24 }
  0x64   : > { %424 = vrot.lane.b32.xlu1 %v1855_v14, %s1679_s25  ;;  %404 = vrot.lane.b32.xlu0 %v1860_v16, %s1678_s24  ;;  %s1917_s24 = sld [smem:[#allocation2 + $0x2]] }
  0x65   : > { %426 = vrot.lane.b32.xlu2 %v1860_v16, %s1679_s25  ;;  %s1920_s25 = sld [smem:[#allocation2 + $0x1]] }
  0x6a   : > { %v374_v49 = vstv %s1917_s24  ;;  %s1704_s24 = smov 113  }
  0x6b   : > { %v352_v50 = vstv %s1920_s25  ;;  %s2170_s25 = sld [smem:[#allocation2 + $0x9]] }
  0x6c   : > { %448 = vrot.lane.b32.xlu1 %v1860_v16, %s1680_s26  ;;  %446 = vrot.lane.b32.xlu0 %v1855_v14, %s1680_s26  ;;  %s1696_s26 = smov 3  }
  0x6d   : > { %468 = vrot.lane.b32.xlu2 %v1855_v14, %s1681_s27 }
  0x74   : > { %485 = vrot.lane.b32.xlu1 %v1855_v14, %s1682_s28  ;;  %470 = vrot.lane.b32.xlu0 %v1860_v16, %s1681_s27  ;;  %s1925_s27 = sld [smem:[#allocation2]] }
  0x75   : > { %487 = vrot.lane.b32.xlu2 %v1860_v16, %s1682_s28  ;;  %s1697_s28 = smov 2  }
  0x7a   : > { %v330_v55 = vstv %s1925_s27  ;;  %s2193_s27 = sld [smem:[#allocation2 + $0xa]] }
  0x7c   : > { %504 = vrot.lane.b32.xlu1 %v1860_v16, %s1683_s29  ;;  %502 = vrot.lane.b32.xlu0 %v1855_v14, %s1683_s29  ;;  %s1698_s29 = smov 1  }
  0x7d   : > { %519 = vrot.lane.b32.xlu2 %v1855_v14, %s1684_s4 }
  0x84   : > { %536 = vrot.lane.b32.xlu1 %v1855_v14, %s1685_s5  ;;  %521 = vrot.lane.b32.xlu0 %v1860_v16, %s1684_s4  ;;  %s2002_s4 = sld [smem:[#allocation2 + $0x3]] }
  0x85   : > { %538 = vrot.lane.b32.xlu2 %v1860_v16, %s1685_s5  ;;  %s1699_s5 = smov 127  }
  0x8a   : > { %v396_v32 = vstv %s2002_s4  ;;  %s1707_s4 = smov 110  }
  0x8c   : > { %555 = vrot.lane.b32.xlu1 %v1860_v16, %s1686_s9  ;;  %553 = vrot.lane.b32.xlu0 %v1855_v14, %s1686_s9  ;;  %s2048_s9 = sld [smem:[#allocation2 + $0x4]] }
  0x8d   : > { %570 = vrot.lane.b32.xlu2 %v1855_v14, %s1687_s10 }
  0x94   : > { %587 = vrot.lane.b32.xlu1 %v1855_v14, %s1688_s23  ;;  %572 = vrot.lane.b32.xlu0 %v1860_v16, %s1687_s10  ;;  %s1700_s10 = smov 126  }
  0x95   : > { %589 = vrot.lane.b32.xlu2 %v1860_v16, %s1688_s23  ;;  %s2052_s23 = sld [smem:[#allocation2 + $0x5]] }
  0x9c   : > { %606 = vrot.lane.b32.xlu1 %v1860_v16, %s1689_s11  ;;  %604 = vrot.lane.b32.xlu0 %v1855_v14, %s1689_s11  ;;  %s1701_s11 = smov 125  }
  0x9d   : > { %621 = vrot.lane.b32.xlu2 %v1855_v14, %s1690_s17 }
  0xa4   : > { %638 = vrot.lane.b32.xlu1 %v1855_v14, %s1691_s18  ;;  %623 = vrot.lane.b32.xlu0 %v1860_v16, %s1690_s17  ;;  %s2105_s17 = sld [smem:[#allocation2 + $0x6]] }
  0xa5   : > { %640 = vrot.lane.b32.xlu2 %v1860_v16, %s1691_s18  ;;  %s1702_s18 = smov 115  }
  0xa7   : > { %v359_v18 = vpop.permute.xlu2 %358 }
  0xac   : > { %657 = vrot.lane.b32.xlu1 %v1860_v16, %s1692_s20  ;;  %655 = vrot.lane.b32.xlu0 %v1855_v14, %s1692_s20  ;;  %s2136_s20 = sld [smem:[#allocation2 + $0x7]] }
  0xad   : > { %672 = vrot.lane.b32.xlu2 %v1855_v14, %s1693_s21 }
  0xaf   : > { %v361_v22 = vpop.permute.xlu2 %360 }
  0xb0   : > { %v1905_v23 = vsel %vm362_vm1, %v359_v18, %v361_v22  ;;  %v1907_v24 = vsel %vm362_vm1, %v361_v22, %v359_v18  ;;  %vm291_vm1 = vcmp.lt.s32.totalorder %v289_v33, 16  ;;  %v2999_v18 = vmov 0 }
  0xb1   : > { %vm1963_vm7 = vmand %vm290_vm0, %vm291_vm1  ;;  %vm301_vm0 = vcmp.lt.s32.totalorder %v299_v44, 16  ;;  %v372_v59 = vsel %vm1947_vm3, %v1907_v24, 0.0  ;;  %v373_v60 = vsel %vm1956_vm5, %v1905_v23, 0.0  ;;  %vm2028_vm3 = vcmp.ne.s32.totalorder %v388_v57, 0 }
  0xb2   : > { %v409_v63 = vsel %vm1963_vm7, 1, %v1695_v28  ;;  %vm302_vm1 = vmand %vm300_vm15, %vm301_vm0  ;;  %v375_v15 = vmul.f32 %v374_v49, %v372_v59  ;;  %v3000_v18 = vsel %vm2028_vm3, 4294967295, %v2999_v18  ;;  %v376_v20 = vmul.f32 %v374_v49, %v373_v60 }
  0xb3   : > { %v431_v23 = vsel %vm302_vm1, 1, %v1695_v28  ;;  %vm2036_vm7 = vcmp.ne.s32.totalorder %v389_v58, 0  ;;  %v3001_v24 = vmov 0  ;;  %v410_v25 = vperm.slane %v409_v63, 0 }
  0xb4   : > { %689 = vrot.lane.b32.xlu1 %v1855_v14, %s1694_s22  ;;  %674 = vrot.lane.b32.xlu0 %v1860_v16, %s1693_s21  ;;  %v3002_v24 = vsel %vm2036_vm7, 4294967295, %v3001_v24  ;;  %v432_v34 = vperm.slane %v431_v23, 0  ;;  %v411_v42 = vperm.slane %v409_v63, 1  ;;  %v433_v49 = vperm.slane %v431_v23, 1  ;;  %s1703_s21 = smov 114  }
  0xb5   : > { %691 = vrot.lane.b32.xlu2 %v1860_v16, %s1694_s22  ;;  %vm2065_vm0 = vcmp.ne.s32.totalorder %v410_v25, 0  ;;  %v3011_v57 = vmov 0  ;;  %v418_v60 = vstv %s2048_s9  ;;  %v3019_v23 = vmov 0  ;;  %s2140_s22 = sld [smem:[#allocation2 + $0x8]]  ;;  %s1708_s9 = smov 109  }
  0xb6   : > { %v3006_v47 = vsel %vm2065_vm0, 4294967295, %v3005_v47  ;;  %vm2069_vm1 = vcmp.ne.s32.totalorder %v432_v34, 0 }
  0xb7   : > { %v1914_v27 = vpop.permute.xlu2 %402 }
  0xbc   : > { %708 = vrot.lane.b32.xlu1 %v1860_v16, %s1696_s26  ;;  %706 = vrot.lane.b32.xlu0 %v1855_v14, %s1696_s26  ;;  %s1705_s26 = smov 112  }
  0xbd   : > { %723 = vrot.lane.b32.xlu2 %v1855_v14, %s1697_s28 }
  0xbe   : > { %v337_v35 = vpop.permute.xlu1 %336  ;;  %v315_v36 = vpop.permute.xlu0 %314 }
  0xbf   : > { %v1936_v40 = vpop.permute.xlu2 %426 }
  0xc4   : > { %740 = vrot.lane.b32.xlu1 %v1855_v14, %s1698_s29  ;;  %725 = vrot.lane.b32.xlu0 %v1860_v16, %s1697_s28  ;;  %s1706_s28 = smov 111  }
  0xc5   : > { %742 = vrot.lane.b32.xlu2 %v1860_v16, %s1698_s29  ;;  %s2197_s29 = sld [smem:[#allocation2 + $0xb]] }
  0xc6   : > { %v339_v61 = vpop.permute.xlu1 %338  ;;  %v317_v62 = vpop.permute.xlu0 %316 }
  0xc7   : > { %v341_v1 = vsel %vm340_vm6, %v337_v35, %v339_v61  ;;  %v342_v2 = vsel %vm340_vm6, %v339_v61, %v337_v35  ;;  %v319_v3 = vsel %vm318_vm10, %v315_v36, %v317_v62  ;;  %v320_v4 = vsel %vm318_vm10, %v317_v62, %v315_v36  ;;  %v2016_v5 = vpop.permute.xlu2 %468 }
  0xc8   : > { %v350_v6 = vsel %vm1977_vm9, %v342_v2, 0.0  ;;  %v351_v7 = vsel %vm1969_vm8, %v341_v1, 0.0  ;;  %v328_v8 = vsel %vm1991_vm12, %v320_v4, 0.0  ;;  %v329_v9 = vsel %vm1982_vm11, %v319_v3, 0.0  ;;  %vm2044_vm9 = vmand %vm244_vm13, %vm2028_vm3 }
  0xc9   : > { %v353_v10 = vmul.f32 %v352_v50, %v350_v6  ;;  %v354_v11 = vmul.f32 %v352_v50, %v351_v7  ;;  %v331_v12 = vmul.f32 %v330_v55, %v328_v8  ;;  %v332_v13 = vmul.f32 %v330_v55, %v329_v9 }
  0xca   : > { %vm384_vm6 = vcmp.lt.s32.totalorder %v1896_v19, 48  ;;  %vm310_vm10 = vcmp.ge.s32.totalorder %v309_v0, 0  ;;  %vm311_vm12 = vcmp.lt.s32.totalorder %v309_v0, 16  ;;  %v3007_v50 = vmov 0 }
  0xcb   : > { %v355_v21 = vadd.f32 %v353_v10, %v331_v12  ;;  %v356_v22 = vadd.f32 %v354_v11, %v332_v13  ;;  %vm312_vm15 = vmand %vm310_vm10, %vm311_vm12  ;;  %v3008_v50 = vsel %vm2069_vm1, 4294967295, %v3007_v50  ;;  %vm428_vm10 = vcmp.lt.s32.totalorder %v1896_v19, 46 }
  0xcc   : > { %765 = vrot.lane.b32.xlu1 %v1860_v16, %s1699_s5  ;;  %763 = vrot.lane.b32.xlu0 %v1855_v14, %s1699_s5  ;;  %v453_v55 = vsel %vm312_vm15, 1, %v1695_v28  ;;  %vm2086_vm12 = vcmp.ne.s32.totalorder %v411_v42, 0  ;;  %vm2090_vm15 = vcmp.ne.s32.totalorder %v433_v49, 0  ;;  %v3013_v28 = vmov 0  ;;  %s2226_s5 = sld [smem:[#allocation2 + $0xc]] }
  0xcd   : > { %v377_v26 = vadd.f32 %v375_v15, %v355_v21  ;;  %v378_v29 = vadd.f32 %v376_v20, %v356_v22  ;;  %780 = vrot.lane.b32.xlu2 %v1855_v14, %s1700_s10  ;;  %v3012_v57 = vsel %vm2086_vm12, 4294967295, %v3011_v57  ;;  %v3014_v28 = vsel %vm2090_vm15, 4294967295, %v3013_v28 }
  0xce   : > { %v383_v31 = vpop.permute.xlu1 %382  ;;  %v381_v33 = vpop.permute.xlu0 %380  ;;  %v440_v62 = vstv %s2052_s23  ;;  %v454_v63 = vperm.slane %v453_v55, 0  ;;  %v455_v0 = vperm.slane %v453_v55, 1  ;;  %v479_v49 = vstv %s2136_s20  ;;  %s1709_s23 = smov 99   ;;  %s1711_s20 = smov 97  }
  0xcf   : > { %v385_v35 = vsel %vm384_vm6, %v381_v33, %v383_v31  ;;  %v386_v36 = vsel %vm384_vm6, %v383_v31, %v381_v33  ;;  %v2058_v37 = vpop.permute.xlu2 %487  ;;  %vm406_vm6 = vcmp.lt.s32.totalorder %v1896_v19, 47 }
  0xd0   : > { %v394_v38 = vsel %vm2044_vm9, %v386_v36, 0.0  ;;  %v395_v41 = vsel %vm2036_vm7, %v385_v35, 0.0  ;;  %vm2081_vm9 = vmand %vm244_vm13, %vm2065_vm0 }
  0xd1   : > { %v397_v44 = vmul.f32 %v396_v32, %v394_v38  ;;  %v398_v45 = vmul.f32 %v396_v32, %v395_v41  ;;  %vm2098_vm7 = vmand %vm244_vm13, %vm2069_vm1 }
  0xd3   : > { %v399_v51 = vadd.f32 %v397_v44, %v377_v26  ;;  %v400_v53 = vadd.f32 %v398_v45, %v378_v29  ;;  %v462_v26 = vstv %s2105_s17  ;;  %s1710_s17 = smov 98  }
  0xd4   : > { %797 = vrot.lane.b32.xlu1 %v1855_v14, %s1701_s11  ;;  %782 = vrot.lane.b32.xlu0 %v1860_v16, %s1700_s10  ;;  %s2249_s10 = sld [smem:[#allocation2 + $0xd]] }
  0xd5   : > { %799 = vrot.lane.b32.xlu2 %v1860_v16, %s1701_s11  ;;  %s2253_s11 = sld [smem:[#allocation2 + $0xe]] }
  0xd6   : > { %v425_v59 = vpop.permute.xlu1 %424  ;;  %v405_v61 = vpop.permute.xlu0 %404 }
  0xd7   : > { %v407_v1 = vsel %vm406_vm6, %v1914_v27, %v405_v61  ;;  %v408_v2 = vsel %vm406_vm6, %v405_v61, %v1914_v27  ;;  %v429_v3 = vsel %vm428_vm10, %v425_v59, %v1936_v40  ;;  %v430_v4 = vsel %vm428_vm10, %v1936_v40, %v425_v59  ;;  %v2111_v6 = vpop.permute.xlu2 %519 }
  0xd8   : > { %v416_v7 = vsel %vm2081_vm9, %v408_v2, 0.0  ;;  %v417_v8 = vsel %vm2086_vm12, %v407_v1, 0.0  ;;  %v438_v9 = vsel %vm2098_vm7, %v430_v4, 0.0  ;;  %v439_v10 = vsel %vm2090_vm15, %v429_v3, 0.0 }
  0xd9   : > { %v419_v11 = vmul.f32 %v418_v60, %v416_v7  ;;  %v420_v27 = vmul.f32 %v418_v60, %v417_v8  ;;  %v441_v12 = vmul.f32 %v440_v62, %v438_v9  ;;  %v442_v13 = vmul.f32 %v440_v62, %v439_v10 }
  0xda   : > { %vm2121_vm6 = vcmp.ne.s32.totalorder %v454_v63, 0  ;;  %v3017_v40 = vmov 0  ;;  %vm450_vm7 = vcmp.lt.s32.totalorder %v1896_v19, 45  ;;  %vm2128_vm9 = vcmp.ne.s32.totalorder %v455_v0, 0 }
  0xdb   : > { %v3018_v40 = vsel %vm2121_vm6, 4294967295, %v3017_v40  ;;  %v421_v15 = vadd.f32 %v419_v11, %v399_v51  ;;  %v422_v20 = vadd.f32 %v420_v27, %v400_v53  ;;  %v3020_v23 = vsel %vm2128_vm9, 4294967295, %v3019_v23  ;;  %vm458_vm10 = vmand %vm244_vm13, %vm2121_vm6 }
  0xdc   : > { %816 = vrot.lane.b32.xlu1 %v1860_v16, %s1702_s18  ;;  %814 = vrot.lane.b32.xlu0 %v1855_v14, %s1702_s18  ;;  %vm2951_vm13 = vcmp.ge.s32.totalorder %v1896_v19, 32  ;;  %v496_v53 = vstv %s2140_s22  ;;  %v513_v10 = vstv %s2170_s25  ;;  %s2283_s18 = sld [smem:[#allocation2 + $0xf]]  ;;  %s1712_s22 = smov 96  }
  0xdd   : > { %v443_v21 = vadd.f32 %v441_v12, %v421_v15  ;;  %v444_v22 = vadd.f32 %v442_v13, %v422_v20  ;;  %831 = vrot.lane.b32.xlu2 %v1855_v14, %s1703_s21  ;;  %vm2163_vm6 = vmand %vm2951_vm13, %vm1938_vm2  ;;  %s1713_s25 = smov 95  }
  0xde   : > { %v449_v25 = vpop.permute.xlu1 %448  ;;  %v447_v29 = vpop.permute.xlu0 %446 }
  0xdf   : > { %v451_v30 = vsel %vm450_vm7, %v447_v29, %v449_v25  ;;  %v452_v31 = vsel %vm450_vm7, %v449_v25, %v447_v29  ;;  %v2142_v32 = vpop.permute.xlu2 %538  ;;  %vm472_vm7 = vcmp.lt.s32.totalorder %v1896_v19, 35 }
  0xe0   : > { %v460_v33 = vsel %vm458_vm10, %v452_v31, 0.0  ;;  %v461_v34 = vsel %vm2128_vm9, %v451_v30, 0.0  ;;  %vm2154_vm10 = vmand %vm2951_vm13, %vm1951_vm4  ;;  %vm489_vm9 = vcmp.lt.s32.totalorder %v1896_v19, 34 }
  0xe1   : > { %v463_v35 = vmul.f32 %v462_v26, %v460_v33  ;;  %v464_v36 = vmul.f32 %v462_v26, %v461_v34  ;;  %v530_v33 = vstv %s2193_s27  ;;  %s1714_s27 = smov 94  }
  0xe3   : > { %v465_v38 = vadd.f32 %v463_v35, %v443_v21  ;;  %v466_v41 = vadd.f32 %v464_v36, %v444_v22  ;;  %v547_v35 = vstv %s2197_s29  ;;  %s1715_s29 = smov 93  }
  0xe4   : > { %848 = vrot.lane.b32.xlu1 %v1855_v14, %s1704_s24  ;;  %833 = vrot.lane.b32.xlu0 %v1860_v16, %s1703_s21  ;;  %s2306_s21 = sld [smem:[#allocation2 + $0x10]] }
  0xe5   : > { %850 = vrot.lane.b32.xlu2 %v1860_v16, %s1704_s24  ;;  %s2310_s24 = sld [smem:[#allocation2 + $0x11]] }
  0xe6   : > { %v486_v45 = vpop.permute.xlu1 %485  ;;  %v471_v51 = vpop.permute.xlu0 %470 }
  0xe7   : > { %v473_v55 = vsel %vm472_vm7, %v2016_v5, %v471_v51  ;;  %v474_v56 = vsel %vm472_vm7, %v471_v51, %v2016_v5  ;;  %v490_v58 = vsel %vm489_vm9, %v486_v45, %v2058_v37  ;;  %v491_v59 = vsel %vm489_vm9, %v2058_v37, %v486_v45  ;;  %v2176_v60 = vpop.permute.xlu2 %570 }
  0xe8   : > { %v477_v61 = vsel %vm2154_vm10, %v474_v56, 0.0  ;;  %v478_v62 = vsel %vm1982_vm11, %v473_v55, 0.0  ;;  %v494_v63 = vsel %vm2163_vm6, %v491_v59, 0.0  ;;  %v495_v0 = vsel %vm1969_vm8, %v490_v58, 0.0  ;;  %vm509_vm6 = vmand %vm2951_vm13, %vm1932_vm14 }
  0xe9   : > { %v480_v1 = vmul.f32 %v479_v49, %v477_v61  ;;  %v481_v5 = vmul.f32 %v479_v49, %v478_v62  ;;  %v497_v2 = vmul.f32 %v496_v53, %v494_v63  ;;  %v498_v3 = vmul.f32 %v496_v53, %v495_v0  ;;  %vm2210_vm10 = vmand %vm2951_vm13, %vm2028_vm3 }
  0xea   : > { %vm506_vm9 = vcmp.lt.s32.totalorder %v1896_v19, 33  ;;  %vm523_vm7 = vcmp.lt.s32.totalorder %v1896_v19, 32  ;;  %v564_v0 = vstv %s2226_s5  ;;  %s1716_s5 = smov 83  }
  0xeb   : > { %v482_v37 = vadd.f32 %v480_v1, %v465_v38  ;;  %v483_v4 = vadd.f32 %v481_v5, %v466_v41 }
  0xec   : > { %867 = vrot.lane.b32.xlu1 %v1860_v16, %s1705_s26  ;;  %865 = vrot.lane.b32.xlu0 %v1855_v14, %s1705_s26  ;;  %s2339_s26 = sld [smem:[#allocation2 + $0x12]] }
  0xed   : > { %v499_v7 = vadd.f32 %v497_v2, %v482_v37  ;;  %v500_v8 = vadd.f32 %v498_v3, %v483_v4  ;;  %882 = vrot.lane.b32.xlu2 %v1855_v14, %s1706_s28 }
  0xee   : > { %v505_v9 = vpop.permute.xlu1 %504  ;;  %v503_v11 = vpop.permute.xlu0 %502 }
  0xef   : > { %v507_v27 = vsel %vm506_vm9, %v503_v11, %v505_v9  ;;  %v508_v12 = vsel %vm506_vm9, %v505_v9, %v503_v11  ;;  %v2199_v13 = vpop.permute.xlu2 %589  ;;  %vm540_vm9 = vcmp.lt.s32.totalorder %v1896_v19, 31 }
  0xf0   : > { %v511_v15 = vsel %vm509_vm6, %v508_v12, 0.0  ;;  %v512_v20 = vsel %vm1956_vm5, %v507_v27, 0.0  ;;  %vm2219_vm6 = vmand %vm2951_vm13, %vm2065_vm0  ;;  %vm3029_vm13 = vnez %v3002_v24 }
  0xf1   : > { %v514_v21 = vmul.f32 %v513_v10, %v511_v15  ;;  %v515_v22 = vmul.f32 %v513_v10, %v512_v20  ;;  %v581_v15 = vstv %s2249_s10  ;;  %s1717_s10 = smov 82  }
  0xf3   : > { %v516_v25 = vadd.f32 %v514_v21, %v499_v7  ;;  %v517_v26 = vadd.f32 %v515_v22, %v500_v8  ;;  %v598_v21 = vstv %s2253_s11  ;;  %s1718_s11 = smov 81  }
  0xf4   : > { %899 = vrot.lane.b32.xlu1 %v1855_v14, %s1707_s4  ;;  %884 = vrot.lane.b32.xlu0 %v1860_v16, %s1706_s28  ;;  %s2362_s28 = sld [smem:[#allocation2 + $0x13]] }
  0xf5   : > { %901 = vrot.lane.b32.xlu2 %v1860_v16, %s1707_s4  ;;  %s2366_s4 = sld [smem:[#allocation2 + $0x14]] }
  0xf6   : > { %v537_v31 = vpop.permute.xlu1 %536  ;;  %v522_v34 = vpop.permute.xlu0 %521 }
  0xf7   : > { %v524_v36 = vsel %vm523_vm7, %v2111_v6, %v522_v34  ;;  %v525_v38 = vsel %vm523_vm7, %v522_v34, %v2111_v6  ;;  %v541_v41 = vsel %vm540_vm9, %v537_v31, %v2142_v32  ;;  %v542_v42 = vsel %vm540_vm9, %v2142_v32, %v537_v31  ;;  %v2232_v44 = vpop.permute.xlu2 %621 }
  0xf8   : > { %v528_v45 = vsel %vm2210_vm10, %v525_v38, 0.0  ;;  %v529_v49 = vsel %vm3029_vm13, %v524_v36, 0.0  ;;  %v545_v51 = vsel %vm2219_vm6, %v542_v42, 0.0  ;;  %v546_v53 = vsel %vm2086_vm12, %v541_v41, 0.0 }
  0xf9   : > { %v531_v55 = vmul.f32 %v530_v33, %v528_v45  ;;  %v532_v6 = vmul.f32 %v530_v33, %v529_v49  ;;  %v548_v56 = vmul.f32 %v547_v35, %v545_v51  ;;  %v549_v58 = vmul.f32 %v547_v35, %v546_v53 }
  0xfa   : > { %vm557_vm7 = vcmp.lt.s32.totalorder %v1896_v19, 30  ;;  %vm3030_vm10 = vcmp.ge.s32.totalorder %v1896_v19, 32  ;;  %vm264_vm6 = vcmp.ge.s32.totalorder %v1896_v19, 16  ;;  %v615_v53 = vstv %s2283_s18  ;;  %s2426_s18 = sld [smem:[#allocation2 + $0x18]] }
  0xfb   : > { %v533_v32 = vadd.f32 %v531_v55, %v516_v25  ;;  %v534_v59 = vadd.f32 %v532_v6, %v517_v26  ;;  %vm560_vm9 = vmand %vm3030_vm10, %vm2069_vm1  ;;  %vm3031_vm10 = vnez %v3018_v40 }
  0xfc   : > { %918 = vrot.lane.b32.xlu1 %v1860_v16, %s1708_s9  ;;  %916 = vrot.lane.b32.xlu0 %v1855_v14, %s1708_s9  ;;  %vm2276_vm12 = vmand %vm264_vm6, %vm1951_vm4  ;;  %s2395_s9 = sld [smem:[#allocation2 + $0x15]] }
  0xfd   : > { %v550_v61 = vadd.f32 %v548_v56, %v533_v32  ;;  %v551_v62 = vadd.f32 %v549_v58, %v534_v59  ;;  %933 = vrot.lane.b32.xlu2 %v1855_v14, %s1709_s23 }
  0xfe   : > { %v556_v63 = vpop.permute.xlu1 %555  ;;  %v554_v1 = vpop.permute.xlu0 %553 }
  0xff   : > { %v558_v5 = vsel %vm557_vm7, %v554_v1, %v556_v63  ;;  %v559_v2 = vsel %vm557_vm7, %v556_v63, %v554_v1  ;;  %v2255_v3 = vpop.permute.xlu2 %640  ;;  %vm574_vm7 = vcmp.lt.s32.totalorder %v1896_v19, 29 }
 0x100   : > { %v562_v37 = vsel %vm560_vm9, %v559_v2, 0.0  ;;  %v563_v4 = vsel %vm2090_vm15, %v558_v5, 0.0  ;;  %vm3032_vm9 = vcmp.ge.s32.totalorder %v1896_v19, 32  ;;  %vm591_vm15 = vcmp.lt.s32.totalorder %v1896_v19, 19 }
 0x101   : > { %v565_v7 = vmul.f32 %v564_v0, %v562_v37  ;;  %v566_v8 = vmul.f32 %v564_v0, %v563_v4  ;;  %vm2267_vm1 = vmand %vm3032_vm9, %vm3031_vm10  ;;  %vm3037_vm9 = vnez %v3020_v23  ;;  %v632_v37 = vstv %s2306_s21  ;;  %s2435_s21 = sld [smem:[#allocation2 + $0x19]] }
 0x103   : > { %v567_v9 = vadd.f32 %v565_v7, %v550_v61  ;;  %v568_v10 = vadd.f32 %v566_v8, %v551_v62  ;;  %v649_v7 = vstv %s2310_s24  ;;  %s2457_s24 = sld [smem:[#allocation2 + $0x1a]] }
 0x104   : > { %950 = vrot.lane.b32.xlu1 %v1855_v14, %s1710_s17  ;;  %935 = vrot.lane.b32.xlu0 %v1860_v16, %s1709_s23  ;;  %s2414_s23 = sld [smem:[#allocation2 + $0x16]] }
 0x105   : > { %952 = vrot.lane.b32.xlu2 %v1860_v16, %s1710_s17  ;;  %s2418_s17 = sld [smem:[#allocation2 + $0x17]] }
 0x106   : > { %v588_v12 = vpop.permute.xlu1 %587  ;;  %v573_v20 = vpop.permute.xlu0 %572 }
 0x107   : > { %v575_v22 = vsel %vm574_vm7, %v2176_v60, %v573_v20  ;;  %v576_v25 = vsel %vm574_vm7, %v573_v20, %v2176_v60  ;;  %v592_v26 = vsel %vm591_vm15, %v588_v12, %v2199_v13  ;;  %v593_v29 = vsel %vm591_vm15, %v2199_v13, %v588_v12  ;;  %v2289_v30 = vpop.permute.xlu2 %672  ;;  %vm2323_vm7 = vmand %vm264_vm6, %vm1932_vm14 }
 0x108   : > { %v579_v31 = vsel %vm2267_vm1, %v576_v25, 0.0  ;;  %v580_v33 = vsel %vm3037_vm9, %v575_v22, 0.0  ;;  %v596_v34 = vsel %vm2276_vm12, %v593_v29, 0.0  ;;  %v597_v35 = vsel %vm1982_vm11, %v592_v26, 0.0  ;;  %vm611_vm12 = vmand %vm264_vm6, %vm1938_vm2 }
 0x109   : > { %v582_v36 = vmul.f32 %v581_v15, %v579_v31  ;;  %v583_v60 = vmul.f32 %v581_v15, %v580_v33  ;;  %v599_v38 = vmul.f32 %v598_v21, %v596_v34  ;;  %v600_v41 = vmul.f32 %v598_v21, %v597_v35 }
 0x10a   : > { %vm608_vm1 = vcmp.lt.s32.totalorder %v1896_v19, 18  ;;  %vm625_vm15 = vcmp.lt.s32.totalorder %v1896_v19, 17  ;;  %v666_v35 = vstv %s2339_s26  ;;  %s2461_s26 = sld [smem:[#allocation2 + $0x1b]] }
 0x10b   : > { %v584_v13 = vadd.f32 %v582_v36, %v567_v9  ;;  %v585_v42 = vadd.f32 %v583_v60, %v568_v10 }
 0x10c   : > { %969 = vrot.lane.b32.xlu1 %v1860_v16, %s1711_s20  ;;  %967 = vrot.lane.b32.xlu0 %v1855_v14, %s1711_s20  ;;  %s1719_s20 = smov 80  }
 0x10d   : > { %v601_v45 = vadd.f32 %v599_v38, %v584_v13  ;;  %v602_v49 = vadd.f32 %v600_v41, %v585_v42  ;;  %984 = vrot.lane.b32.xlu2 %v1855_v14, %s1712_s22 }
 0x10e   : > { %v607_v51 = vpop.permute.xlu1 %606  ;;  %v605_v55 = vpop.permute.xlu0 %604 }
 0x10f   : > { %v609_v6 = vsel %vm608_vm1, %v605_v55, %v607_v51  ;;  %v610_v56 = vsel %vm608_vm1, %v607_v51, %v605_v55  ;;  %v2312_v58 = vpop.permute.xlu2 %691  ;;  %vm642_vm1 = vcmp.lt.s32.totalorder %v1896_v19, 16 }
 0x110   : > { %v613_v32 = vsel %vm611_vm12, %v610_v56, 0.0  ;;  %v614_v59 = vsel %vm1969_vm8, %v609_v6, 0.0  ;;  %vm2332_vm12 = vmand %vm264_vm6, %vm2028_vm3  ;;  %vm693_vm3 = vcmp.lt.s32.totalorder %v1896_v19, 13 }
 0x111   : > { %v616_v61 = vmul.f32 %v615_v53, %v613_v32  ;;  %v617_v62 = vmul.f32 %v615_v53, %v614_v59  ;;  %v683_v32 = vstv %s2362_s28  ;;  %s2479_s28 = sld [smem:[#allocation2 + $0x1c]] }
 0x113   : > { %v618_v63 = vadd.f32 %v616_v61, %v601_v45  ;;  %v619_v0 = vadd.f32 %v617_v62, %v602_v49  ;;  %v700_v61 = vstv %s2366_s4  ;;  %s1371_s4 = sld [smem:[#allocation2 + $0x1e]] }
 0x114   : > { %1001 = vrot.lane.b32.xlu1 %v1855_v14, %s1713_s25  ;;  %986 = vrot.lane.b32.xlu0 %v1860_v16, %s1712_s22  ;;  %s1720_s22 = smov 79  }
 0x115   : > { %1003 = vrot.lane.b32.xlu2 %v1860_v16, %s1713_s25  ;;  %s1721_s25 = smov 78  }
 0x116   : > { %v639_v2 = vpop.permute.xlu1 %638  ;;  %v624_v4 = vpop.permute.xlu0 %623 }
 0x117   : > { %v626_v8 = vsel %vm625_vm15, %v2232_v44, %v624_v4  ;;  %v627_v9 = vsel %vm625_vm15, %v624_v4, %v2232_v44  ;;  %v643_v10 = vsel %vm642_vm1, %v639_v2, %v2255_v3  ;;  %v644_v11 = vsel %vm642_vm1, %v2255_v3, %v639_v2  ;;  %v2345_v27 = vpop.permute.xlu2 %723 }
 0x118   : > { %v630_v12 = vsel %vm2323_vm7, %v627_v9, 0.0  ;;  %v631_v15 = vsel %vm1956_vm5, %v626_v8, 0.0  ;;  %v647_v20 = vsel %vm2332_vm12, %v644_v11, 0.0  ;;  %v648_v21 = vsel %vm3029_vm13, %v643_v10, 0.0  ;;  %vm662_vm7 = vmand %vm264_vm6, %vm2065_vm0 }
 0x119   : > { %v633_v22 = vmul.f32 %v632_v37, %v630_v12  ;;  %v634_v44 = vmul.f32 %v632_v37, %v631_v15  ;;  %v650_v25 = vmul.f32 %v649_v7, %v647_v20  ;;  %v651_v26 = vmul.f32 %v649_v7, %v648_v21  ;;  %vm2388_vm13 = vmand %vm264_vm6, %vm3031_vm10 }
 0x11a   : > { %vm659_vm15 = vcmp.lt.s32.totalorder %v1896_v19, 15  ;;  %vm3042_vm1 = vnez %v3012_v57  ;;  %vm676_vm12 = vcmp.lt.s32.totalorder %v1896_v19, 14  ;;  %v717_v21 = vstv %s2395_s9  ;;  %s2530_s9 = sld [smem:[#allocation2 + $0x20]] }
 0x11b   : > { %v635_v3 = vadd.f32 %v633_v22, %v618_v63  ;;  %v636_v29 = vadd.f32 %v634_v44, %v619_v0 }
 0x11c   : > { %1020 = vrot.lane.b32.xlu1 %v1860_v16, %s1714_s27  ;;  %1018 = vrot.lane.b32.xlu0 %v1855_v14, %s1714_s27  ;;  %s1722_s27 = smov 77  }
 0x11d   : > { %v652_v31 = vadd.f32 %v650_v25, %v635_v3  ;;  %v653_v33 = vadd.f32 %v651_v26, %v636_v29  ;;  %1035 = vrot.lane.b32.xlu2 %v1855_v14, %s1715_s29 }
 0x11e   : > { %v658_v34 = vpop.permute.xlu1 %657  ;;  %v656_v36 = vpop.permute.xlu0 %655 }
 0x11f   : > { %v660_v60 = vsel %vm659_vm15, %v656_v36, %v658_v34  ;;  %v661_v38 = vsel %vm659_vm15, %v658_v34, %v656_v36  ;;  %v2368_v41 = vpop.permute.xlu2 %742  ;;  %vm3043_vm15 = vnez %v3008_v50 }
 0x120   : > { %v664_v13 = vsel %vm662_vm7, %v661_v38, 0.0  ;;  %v665_v42 = vsel %vm3042_vm1, %v660_v60, 0.0  ;;  %vm2379_vm7 = vmand %vm264_vm6, %vm3043_vm15  ;;  %vm3048_vm6 = vnez %v3014_v28  ;;  %v734_v60 = vstv %s2414_s23  ;;  %s2576_s23 = sld [smem:[#allocation2 + $0x22]] }
 0x121   : > { %v667_v45 = vmul.f32 %v666_v35, %v664_v13  ;;  %v668_v49 = vmul.f32 %v666_v35, %v665_v42  ;;  %v751_v13 = vstv %s2418_s17  ;;  %s2609_s17 = sld [smem:[#allocation2 + $0x24]] }
 0x123   : > { %v669_v51 = vadd.f32 %v667_v45, %v652_v31  ;;  %v670_v53 = vadd.f32 %v668_v49, %v653_v33 }
 0x124   : > { %1052 = vrot.lane.b32.xlu1 %v1855_v14, %s1716_s5  ;;  %1037 = vrot.lane.b32.xlu0 %v1860_v16, %s1715_s29  ;;  %s1370_s29 = sld [smem:[#allocation2 + $0x1d]] }
 0x125   : > { %1054 = vrot.lane.b32.xlu2 %v1860_v16, %s1716_s5  ;;  %s2528_s5 = sld [smem:[#allocation2 + $0x1f]] }
 0x126   : > { %v690_v56 = vpop.permute.xlu1 %689  ;;  %v675_v59 = vpop.permute.xlu0 %674 }
 0x127   : > { %v677_v62 = vsel %vm676_vm12, %v2289_v30, %v675_v59  ;;  %v678_v63 = vsel %vm676_vm12, %v675_v59, %v2289_v30  ;;  %v694_v0 = vsel %vm693_vm3, %v690_v56, %v2312_v58  ;;  %v695_v1 = vsel %vm693_vm3, %v2312_v58, %v690_v56  ;;  %v2401_v5 = vpop.permute.xlu2 %780 }
 0x128   : > { %v681_v2 = vsel %vm2379_vm7, %v678_v63, 0.0  ;;  %v682_v37 = vsel %vm3048_vm6, %v677_v62, 0.0  ;;  %v698_v4 = vsel %vm2388_vm13, %v695_v1, 0.0  ;;  %v699_v7 = vsel %vm3037_vm9, %v694_v0, 0.0 }
 0x129   : > { %v684_v8 = vmul.f32 %v683_v32, %v681_v2  ;;  %v685_v30 = vmul.f32 %v683_v32, %v682_v37  ;;  %v701_v9 = vmul.f32 %v700_v61, %v698_v4  ;;  %v702_v10 = vmul.f32 %v700_v61, %v699_v7 }
 0x12a   : > { %vm710_vm3 = vcmp.lt.s32.totalorder %v1896_v19, 3  ;;  %vm727_vm13 = vcmp.lt.s32.totalorder %v1896_v19, 2  ;;  %vm744_vm12 = vcmp.lt.s32.totalorder %v1896_v19, 1  ;;  %vm767_vm7 = vcmp.lt.s32.totalorder %v1896_v19, 127 }
 0x12b   : > { %v686_v58 = vadd.f32 %v684_v8, %v669_v51  ;;  %v687_v11 = vadd.f32 %v685_v30, %v670_v53  ;;  %v774_v8 = vstv %s2435_s21  ;;  %s2687_s21 = sld [smem:[#allocation2 + $0x27]] }
 0x12c   : > { %1071 = vrot.lane.b32.xlu1 %v1860_v16, %s1717_s10  ;;  %1069 = vrot.lane.b32.xlu0 %v1855_v14, %s1717_s10  ;;  %s2543_s10 = sld [smem:[#allocation2 + $0x21]] }
 0x12d   : > { %v703_v12 = vadd.f32 %v701_v9, %v686_v58  ;;  %v704_v15 = vadd.f32 %v702_v10, %v687_v11  ;;  %1086 = vrot.lane.b32.xlu2 %v1855_v14, %s1718_s11 }
 0x12e   : > { %v709_v20 = vpop.permute.xlu1 %708  ;;  %v707_v22 = vpop.permute.xlu0 %706 }
 0x12f   : > { %v711_v44 = vsel %vm710_vm3, %v707_v22, %v709_v20  ;;  %v712_v25 = vsel %vm710_vm3, %v709_v20, %v707_v22  ;;  %v2420_v26 = vpop.permute.xlu2 %799  ;;  %vm784_vm3 = vcmp.lt.s32.totalorder %v1896_v19, 126 }
 0x130   : > { %v715_v3 = vsel %vm1951_vm4, %v712_v25, 0.0  ;;  %v716_v29 = vsel %vm1982_vm11, %v711_v44, 0.0 }
 0x131   : > { %v718_v31 = vmul.f32 %v717_v21, %v715_v3  ;;  %v719_v33 = vmul.f32 %v717_v21, %v716_v29  ;;  %v791_v29 = vstv %s2457_s24  ;;  %s2719_s24 = sld [smem:[#allocation2 + $0x29]] }
 0x133   : > { %v720_v34 = vadd.f32 %v718_v31, %v703_v12  ;;  %v721_v35 = vadd.f32 %v719_v33, %v704_v15  ;;  %v808_v33 = vstv %s2461_s26  ;;  %s2770_s26 = sld [smem:[#allocation2 + $0x2b]] }
 0x134   : > { %1103 = vrot.lane.b32.xlu1 %v1855_v14, %s1719_s20  ;;  %1088 = vrot.lane.b32.xlu0 %v1860_v16, %s1718_s11  ;;  %s2597_s11 = sld [smem:[#allocation2 + $0x23]] }
 0x135   : > { %1105 = vrot.lane.b32.xlu2 %v1860_v16, %s1719_s20  ;;  %s2667_s20 = sld [smem:[#allocation2 + $0x26]] }
 0x136   : > { %v741_v36 = vpop.permute.xlu1 %740  ;;  %v726_v38 = vpop.permute.xlu0 %725 }
 0x137   : > { %v728_v42 = vsel %vm727_vm13, %v2345_v27, %v726_v38  ;;  %v729_v45 = vsel %vm727_vm13, %v726_v38, %v2345_v27  ;;  %v745_v49 = vsel %vm744_vm12, %v741_v36, %v2368_v41  ;;  %v746_v51 = vsel %vm744_vm12, %v2368_v41, %v741_v36  ;;  %v2441_v53 = vpop.permute.xlu2 %831 }
 0x138   : > { %v732_v55 = vsel %vm1938_vm2, %v729_v45, 0.0  ;;  %v733_v6 = vsel %vm1969_vm8, %v728_v42, 0.0  ;;  %v749_v56 = vsel %vm1932_vm14, %v746_v51, 0.0  ;;  %v750_v32 = vsel %vm1956_vm5, %v745_v49, 0.0 }
 0x139   : > { %v735_v59 = vmul.f32 %v734_v60, %v732_v55  ;;  %v736_v27 = vmul.f32 %v734_v60, %v733_v6  ;;  %v752_v61 = vmul.f32 %v751_v13, %v749_v56  ;;  %v753_v62 = vmul.f32 %v751_v13, %v750_v32 }
 0x13a   : > { %v757_v41 = vstv %s2426_s18  ;;  %vm801_vm13 = vcmp.lt.s32.totalorder %v1896_v19, 125  ;;  %s2637_s18 = sld [smem:[#allocation2 + $0x25]] }
 0x13b   : > { %v737_v63 = vadd.f32 %v735_v59, %v720_v34  ;;  %v738_v0 = vadd.f32 %v736_v27, %v721_v35  ;;  %v759_v37 = vmul.f32 %v757_v41, %v1860_v16  ;;  %v758_v4 = vmul.f32 %v757_v41, %v1855_v14 }
 0x13c   : > { %1122 = vrot.lane.b32.xlu1 %v1860_v16, %s1720_s22  ;;  %1120 = vrot.lane.b32.xlu0 %v1855_v14, %s1720_s22  ;;  %v2477_v34 = vadd.s32 128, %v1896_v19  ;;  %v825_v27 = vstv %s2479_s28  ;;  %s2691_s22 = sld [smem:[#allocation2 + $0x28]] }
 0x13d   : > { %v754_v1 = vadd.f32 %v752_v61, %v737_v63  ;;  %v755_v2 = vadd.f32 %v753_v62, %v738_v0  ;;  %1137 = vrot.lane.b32.xlu2 %v1855_v14, %s1721_s25  ;;  %s2796_s28 = sld [smem:[#allocation2 + $0x2d]] }
 0x13e   : > { %v766_v7 = vpop.permute.xlu1 %765  ;;  %v764_v30 = vpop.permute.xlu0 %763  ;;  %vm2966_vm12 = vcmp.lt.s32.totalorder %v2477_v34, 240 }
 0x13f   : > { %v768_v9 = vsel %vm767_vm7, %v764_v30, %v766_v7  ;;  %v769_v10 = vsel %vm767_vm7, %v766_v7, %v764_v30  ;;  %v2463_v58 = vpop.permute.xlu2 %850  ;;  %v761_v15 = vadd.f32 %v759_v37, %v755_v2  ;;  %v760_v20 = vadd.f32 %v758_v4, %v754_v1 }
 0x140   : > { %v772_v11 = vsel %vm2065_vm0, %v768_v9, 0.0  ;;  %v773_v12 = vsel %vm3042_vm1, %v769_v10, 0.0  ;;  %vm818_vm7 = vcmp.lt.s32.totalorder %v1896_v19, 115  ;;  %v842_v30 = vstv %s1370_s29  ;;  %s2816_s29 = sld [smem:[#allocation2 + $0x2e]] }
 0x141   : > { %v775_v21 = vmul.f32 %v774_v8, %v772_v11  ;;  %v776_v22 = vmul.f32 %v774_v8, %v773_v12 }
 0x143   : > { %v777_v44 = vadd.f32 %v775_v21, %v760_v20  ;;  %v778_v25 = vadd.f32 %v776_v22, %v761_v15 }
 0x144   : > { %1139 = vrot.lane.b32.xlu0 %v1860_v16, %s1721_s25  ;;  %1154 = vrot.lane.b32.xlu1 %v1855_v14, %s1722_s27  ;;  %s2752_s25 = sld [smem:[#allocation2 + $0x2a]] }
 0x145   : > { %1156 = vrot.lane.b32.xlu2 %v1860_v16, %s1722_s27  ;;  %s2787_s27 = sld [smem:[#allocation2 + $0x2c]] }
 0x146   : > { %v798_v3 = vpop.permute.xlu1 %797  ;;  %v783_v31 = vpop.permute.xlu0 %782 }
 0x147   : > { %v785_v35 = vsel %vm784_vm3, %v2401_v5, %v783_v31  ;;  %v786_v36 = vsel %vm784_vm3, %v783_v31, %v2401_v5  ;;  %v802_v14 = vsel %vm801_vm13, %v798_v3, %v2420_v26  ;;  %v803_v60 = vsel %vm801_vm13, %v2420_v26, %v798_v3  ;;  %v2485_v38 = vpop.permute.xlu2 %882  ;;  %vm822_vm3 = vmand %vm2966_vm12, %vm1982_vm11 }
 0x148   : > { %v789_v16 = vsel %vm3043_vm15, %v785_v35, 0.0  ;;  %v790_v13 = vsel %vm3048_vm6, %v786_v36, 0.0  ;;  %v806_v42 = vsel %vm3031_vm10, %v802_v14, 0.0  ;;  %v807_v45 = vsel %vm3037_vm9, %v803_v60, 0.0  ;;  %vm839_vm10 = vmand %vm2966_vm12, %vm1969_vm8 }
 0x149   : > { %v792_v5 = vmul.f32 %v791_v29, %v789_v16  ;;  %v793_v49 = vmul.f32 %v791_v29, %v790_v13  ;;  %v809_v51 = vmul.f32 %v808_v33, %v806_v42  ;;  %v810_v55 = vmul.f32 %v808_v33, %v807_v45 }
 0x14a   : > { %vm835_vm13 = vcmp.lt.s32.totalorder %v1896_v19, 114 }
 0x14b   : > { %v794_v26 = vadd.f32 %v792_v5, %v777_v44  ;;  %v795_v6 = vadd.f32 %v793_v49, %v778_v25 }
 0x14d   : > { %v811_v56 = vadd.f32 %v809_v51, %v794_v26  ;;  %v812_v32 = vadd.f32 %v810_v55, %v795_v6  ;;  %v859_v55 = vstv %s1371_s4  ;;  %s2859_s4 = sld [smem:[#allocation2 + $0x2f]] }
 0x14e   : > { %v817_v59 = vpop.permute.xlu1 %816  ;;  %v815_v61 = vpop.permute.xlu0 %814 }
 0x14f   : > { %v819_v62 = vsel %vm818_vm7, %v815_v61, %v817_v59  ;;  %v820_v41 = vsel %vm818_vm7, %v817_v59, %v815_v61  ;;  %v2502_v63 = vpop.permute.xlu2 %901  ;;  %vm2536_vm7 = vmand %vm2966_vm12, %vm1956_vm5 }
 0x150   : > { %v823_v0 = vsel %vm1951_vm4, %v819_v62, 0.0  ;;  %v824_v1 = vsel %vm822_vm3, %v820_v41, 0.0  ;;  %vm869_vm3 = vcmp.lt.s32.totalorder %v1896_v19, 112 }
 0x151   : > { %v826_v2 = vmul.f32 %v825_v27, %v823_v0  ;;  %v827_v37 = vmul.f32 %v825_v27, %v824_v1  ;;  %v876_v27 = vstv %s2528_s5  ;;  %s2862_s5 = sld [smem:[#allocation2 + $0x30]] }
 0x153   : > { %v828_v4 = vadd.f32 %v826_v2, %v811_v56  ;;  %v829_v7 = vadd.f32 %v827_v37, %v812_v32  ;;  %v1148_v28 = vstv %s2859_s4 }
 0x156   : > { %v849_v8 = vpop.permute.xlu1 %848  ;;  %v834_v9 = vpop.permute.xlu0 %833 }
 0x157   : > { %v836_v10 = vsel %vm835_vm13, %v2441_v53, %v834_v9  ;;  %v837_v11 = vsel %vm835_vm13, %v834_v9, %v2441_v53  ;;  %v2515_v22 = vpop.permute.xlu2 %933  ;;  %vm886_vm13 = vcmp.lt.s32.totalorder %v1896_v19, 111 }
 0x158   : > { %v840_v12 = vsel %vm1938_vm2, %v836_v10, 0.0  ;;  %v841_v15 = vsel %vm839_vm10, %v837_v11, 0.0  ;;  %vm852_vm10 = vcmp.lt.s32.totalorder %v1896_v19, 113 }
 0x159   : > { %v843_v20 = vmul.f32 %v842_v30, %v840_v12  ;;  %v844_v21 = vmul.f32 %v842_v30, %v841_v15  ;;  %v853_v45 = vsel %vm852_vm10, %v849_v8, %v2463_v58  ;;  %v854_v5 = vsel %vm852_vm10, %v2463_v58, %v849_v8 }
 0x15a   : > { %v857_v26 = vsel %vm1932_vm14, %v853_v45, 0.0  ;;  %v858_v6 = vsel %vm2536_vm7, %v854_v5, 0.0  ;;  %vm3051_vm10 = vnez %v3002_v24  ;;  %vm2569_vm14 = vmand %vm2966_vm12, %vm3042_vm1  ;;  %vm903_vm7 = vcmp.lt.s32.totalorder %v1896_v19, 110 }
 0x15b   : > { %v845_v44 = vadd.f32 %v843_v20, %v828_v4  ;;  %v846_v25 = vadd.f32 %v844_v21, %v829_v7  ;;  %vm2558_vm5 = vmand %vm2966_vm12, %vm3051_vm10  ;;  %v860_v0 = vmul.f32 %v859_v55, %v857_v26  ;;  %v861_v1 = vmul.f32 %v859_v55, %v858_v6 }
 0x15c   : > { %v893_v4 = vstv %s2530_s9  ;;  %v910_v12 = vstv %s2543_s10  ;;  %v927_v55 = vstv %s2576_s23  ;;  %s1341_s9 = sshll.u32 %s1847_s8, 1  ;;  %s1393_s10 = sshll.u32 %s1764_s16, 1 }
 0x15d   : > { %v862_v21 = vadd.f32 %v860_v0, %v845_v44  ;;  %s217_s16 = scalar_lea.vmem [#allocation9], %s1341_s9 }
 0x15e   : > { %v868_v3 = vpop.permute.xlu1 %867  ;;  %v866_v29 = vpop.permute.xlu0 %865 }
 0x15f   : > { %v2517_v31 = vpop.permute.xlu2 %952  ;;  %v870_v56 = vsel %vm869_vm3, %v866_v29, %v868_v3  ;;  %v871_v32 = vsel %vm869_vm3, %v868_v3, %v866_v29  ;;  %vm3056_vm3 = vnez %v3000_v18  ;;  %v863_v3 = vadd.f32 %v861_v1, %v846_v25 }
 0x160   : > { %v874_v2 = vsel %vm3056_vm3, %v870_v56, 0.0  ;;  %v875_v37 = vsel %vm2558_vm5, %v871_v32, 0.0  ;;  %vm920_vm5 = vcmp.lt.s32.totalorder %v1896_v19, 109 }
 0x161   : > { %v877_v10 = vmul.f32 %v876_v27, %v874_v2  ;;  %v878_v11 = vmul.f32 %v876_v27, %v875_v37 }
 0x163   : > { %v879_v45 = vadd.f32 %v877_v10, %v862_v21  ;;  %v880_v5 = vadd.f32 %v878_v11, %v863_v3 }
 0x166   : > { %v900_v33 = vpop.permute.xlu1 %899  ;;  %v885_v35 = vpop.permute.xlu0 %884 }
 0x167   : > { %v2519_v36 = vpop.permute.xlu2 %984  ;;  %v887_v62 = vsel %vm886_vm13, %v2485_v38, %v885_v35  ;;  %v888_v41 = vsel %vm886_vm13, %v885_v35, %v2485_v38  ;;  %vm2591_vm13 = vmand %vm2966_vm12, %vm3048_vm6  ;;  %v904_v30 = vsel %vm903_vm7, %v900_v33, %v2502_v63  ;;  %v905_v9 = vsel %vm903_vm7, %v2502_v63, %v900_v33 }
 0x168   : > { %v891_v7 = vsel %vm2065_vm0, %v887_v62, 0.0  ;;  %v892_v38 = vsel %vm2569_vm14, %v888_v41, 0.0  ;;  %vm2969_vm14 = vcmp.lt.s32.totalorder %v2477_v34, 224  ;;  %v908_v63 = vsel %vm3043_vm15, %v904_v30, 0.0 }
 0x169   : > { %v894_v29 = vmul.f32 %v893_v4, %v891_v7  ;;  %v895_v35 = vmul.f32 %v893_v4, %v892_v38  ;;  %v909_v33 = vsel %vm2591_vm13, %v905_v9, 0.0  ;;  %vm3059_vm7 = vcmp.lt.s32.totalorder %v2477_v34, 240  ;;  %vm2625_vm13 = vmand %vm2969_vm14, %vm1982_vm11 }
 0x16a   : > { %vm2615_vm0 = vmand %vm3059_vm7, %vm3037_vm9  ;;  %v911_v26 = vmul.f32 %v910_v12, %v908_v63  ;;  %v912_v6 = vmul.f32 %v910_v12, %v909_v33  ;;  %vm3066_vm12 = vnez %v3018_v40  ;;  %v944_v41 = vstv %s2597_s11 }
 0x16b   : > { %v896_v32 = vadd.f32 %v894_v29, %v879_v45  ;;  %v897_v27 = vadd.f32 %v895_v35, %v880_v5  ;;  %v961_v9 = vstv %s2609_s17  ;;  %v978_v63 = vstv %s2637_s18  ;;  %s1230_s17 = scalar_lea.hbm %s2944_s3, %s1393_s10  ;;  %s1232_s18 = sshll.u32 %s217_s16, 4  ;;  %s1233_s18 = int_to_ptr.vmem [resolvable:$true] %s1232_s18 }
 0x16d   : > { %v913_v8 = vadd.f32 %v911_v26, %v896_v32  ;;  %v914_v30 = vadd.f32 %v912_v6, %v897_v27  ;;  %v1080_v27 = vstv %s2770_s26 }
 0x16e   : > { %v919_v14 = vpop.permute.xlu1 %918  ;;  %v917_v53 = vpop.permute.xlu0 %916 }
 0x16f   : > { %v2525_v13 = vpop.permute.xlu2 %1003  ;;  %v921_v25 = vsel %vm920_vm5, %v917_v53, %v919_v14  ;;  %v922_v42 = vsel %vm920_vm5, %v919_v14, %v917_v53  ;;  %vm3064_vm5 = vcmp.lt.s32.totalorder %v1896_v19, 99 }
 0x170   : > { %vm3065_vm7 = vmmov %vm3064_vm5  ;;  %v925_v61 = vsel %vm3066_vm12, %v921_v25, 0.0  ;;  %v926_v62 = vsel %vm2615_vm0, %v922_v42, 0.0 }
 0x171   : > { %v928_v7 = vmul.f32 %v927_v55, %v925_v61  ;;  %v929_v38 = vmul.f32 %v927_v55, %v926_v62 }
 0x173   : > { %v930_v29 = vadd.f32 %v928_v7, %v913_v8  ;;  %v931_v35 = vadd.f32 %v929_v38, %v914_v30  ;;  %v1012_v38 = vstv %s2687_s21  ;;  %v1029_v8 = vstv %s2691_s22  ;;  %s1220_s21 = scalar_lea.sflag [#allocation4], %s1847_s8 }
 0x176   : > { %v2521_v60 = vpop.permute.xlu1 %950  ;;  %v2523_v16 = vpop.permute.xlu0 %935 }
 0x177   : > { %v2562_v59 = vpop.permute.xlu2 %1035  ;;  %v938_v14 = vsel %vm3064_vm5, %v2515_v22, %v2523_v16  ;;  %v939_v53 = vsel %vm3065_vm7, %v2523_v16, %v2515_v22  ;;  %vm2654_vm5 = vmand %vm2969_vm14, %vm1969_vm8  ;;  %vm3069_vm7 = vcmp.lt.s32.totalorder %v1896_v19, 98 }
 0x178   : > { %v942_v0 = vsel %vm1951_vm4, %v938_v14, 0.0  ;;  %v943_v22 = vsel %vm2625_vm13, %v939_v53, 0.0  ;;  %v955_v1 = vsel %vm3069_vm7, %v2521_v60, %v2517_v31  ;;  %vm3070_vm0 = vmmov %vm3069_vm7  ;;  %vm971_vm13 = vcmp.lt.s32.totalorder %v1896_v19, 97 }
 0x179   : > { %v956_v2 = vsel %vm3070_vm0, %v2517_v31, %v2521_v60  ;;  %v945_v10 = vmul.f32 %v944_v41, %v942_v0  ;;  %v946_v11 = vmul.f32 %v944_v41, %v943_v22  ;;  %v959_v12 = vsel %vm1938_vm2, %v955_v1, 0.0 }
 0x17a   : > { %v960_v31 = vsel %vm2654_vm5, %v956_v2, 0.0  ;;  %vm3071_vm7 = vnez %v2988_v48  ;;  %vm3072_vm0 = vcmp.lt.s32.totalorder %v2477_v34, 224  ;;  %v962_v33 = vmul.f32 %v961_v9, %v959_v12 }
 0x17b   : > { %vm2679_vm8 = vmand %vm3072_vm0, %vm3071_vm7  ;;  %v963_v44 = vmul.f32 %v961_v9, %v960_v31  ;;  %v947_v42 = vadd.f32 %v945_v10, %v930_v29  ;;  %v948_v45 = vadd.f32 %v946_v11, %v931_v35  ;;  %vm3079_vm5 = vnez %v2980_v39 }
 0x17c   : > { %vm2697_vm14 = vmand %vm3072_vm0, %vm3051_vm10  ;;  %v995_v14 = vstv %s2667_s20  ;;  %s1234_s20 = sshll.u32 %s1230_s17, 4  ;;  %s1235_s20 = int_to_ptr.hbm [resolvable:$true] %s1234_s20 }
 0x17d   : > { %v964_v41 = vadd.f32 %v962_v33, %v947_v42  ;;  %v965_v0 = vadd.f32 %v963_v44, %v948_v45  ;;  %s1610_s22 = sshra.s32 %s1235_s20, 4  ;;  %s1611_s22 = int_to_ptr.hbm [resolvable:$true] %s1610_s22 }
 0x17e   : > { %v2545_v49 = vpop.permute.xlu1 %969  ;;  %v2547_v51 = vpop.permute.xlu0 %967  ;;  %p1617_p9 = scmp.lt.s32.totalorder %s1611_s22, %s2944_s3 }
 0x17f   : > { %v2639_v56 = vpop.permute.xlu2 %1054  ;;  %v972_v21 = vsel %vm971_vm13, %v2547_v51, %v2545_v49  ;;  %v973_v3 = vsel %vm971_vm13, %v2545_v49, %v2547_v51  ;;  %vm3077_vm13 = vcmp.lt.s32.totalorder %v1896_v19, 96 }
 0x180   : > { %vm3078_vm2 = vmmov %vm3077_vm13  ;;  %v976_v5 = vsel %vm3079_vm5, %v972_v21, 0.0  ;;  %v977_v55 = vsel %vm2679_vm8, %v973_v3, 0.0 }
 0x181   : > { %vm3080_vm8 = vmmov %vm3072_vm0 }
 0x182   : > { %vm2725_vm0 = vmand %vm3080_vm8, %vm3042_vm1 }
 0x183   : > { %vm2742_vm1 = vmand %vm3080_vm8, %vm3048_vm6 }
 0x186   : > { %v2601_v15 = vpop.permute.xlu1 %1001  ;;  %v987_v20 = vpop.permute.xlu0 %986 }
 0x187   : > { %v989_v49 = vsel %vm3077_vm13, %v2519_v36, %v987_v20  ;;  %v990_v51 = vsel %vm3078_vm2, %v987_v20, %v2519_v36  ;;  %v2711_v26 = vpop.permute.xlu2 %1086  ;;  %vm1022_vm2 = vcmp.lt.s32.totalorder %v1896_v19, 94  ;;  %v979_v36 = vmul.f32 %v978_v63, %v976_v5 }
 0x188   : > { %v993_v53 = vsel %vm3056_vm3, %v989_v49, 0.0  ;;  %v994_v32 = vsel %vm2697_vm14, %v990_v51, 0.0  ;;  %v980_v20 = vmul.f32 %v978_v63, %v977_v55  ;;  %vm3083_vm14 = vcmp.lt.s32.totalorder %v1896_v19, 95 }
 0x189   : > { %v1006_v61 = vsel %vm3083_vm14, %v2601_v15, %v2525_v13  ;;  %vm3084_vm13 = vmmov %vm3083_vm14  ;;  %vm1039_vm3 = vcmp.lt.s32.totalorder %v1896_v19, 93  ;;  %v996_v22 = vmul.f32 %v995_v14, %v993_v53  ;;  %v997_v16 = vmul.f32 %v995_v14, %v994_v32 }
 0x18a   : > { %v1007_v62 = vsel %vm3084_vm13, %v2525_v13, %v2601_v15  ;;  %vm3087_vm14 = vnez %v3006_v47  ;;  %v981_v30 = vadd.f32 %v979_v36, %v964_v41  ;;  %v982_v9 = vadd.f32 %v980_v20, %v965_v0  ;;  %vm3088_vm13 = vmmov %vm3080_vm8 }
 0x18b   : > { %v1010_v13 = vsel %vm3087_vm14, %v1006_v61, 0.0  ;;  %v1011_v15 = vsel %vm2725_vm0, %v1007_v62, 0.0  ;;  %vm2758_vm8 = vmand %vm3088_vm13, %vm3037_vm9  ;;  %vm1056_vm0 = vcmp.lt.s32.totalorder %v1896_v19, 83  ;;  %v1063_v14 = vstv %s2752_s25 }
 0x18c   : > { %v998_v31 = vadd.f32 %v996_v22, %v981_v30  ;;  %v999_v60 = vadd.f32 %v997_v16, %v982_v9  ;;  %v1013_v21 = vmul.f32 %v1012_v38, %v1010_v13  ;;  %v1014_v3 = vmul.f32 %v1012_v38, %v1011_v15 }
 0x18d   : > { %vm3093_vm13 = vnez %v2992_v52  ;;  %v1097_v38 = vstv %s2787_s27  ;;  %s1616_s27 = scalar_lea.hbm %s2944_s3, 4 }
 0x18e   : > { %v1021_v37 = vpop.permute.xlu1 %1020  ;;  %v1019_v4 = vpop.permute.xlu0 %1018  ;;  %v1015_v5 = vadd.f32 %v1013_v21, %v998_v31  ;;  %v1016_v55 = vadd.f32 %v1014_v3, %v999_v60 }
 0x18f   : > { %v1023_v2 = vsel %vm1022_vm2, %v1019_v4, %v1021_v37  ;;  %v1024_v7 = vsel %vm1022_vm2, %v1021_v37, %v1019_v4  ;;  %vm306_vm2 = vcmp.lt.s32.totalorder %v2477_v34, 208  ;;  %v1106_v45 = vpop.permute.xlu2 %1105 }
 0x190   : > { %v1027_v11 = vsel %vm3043_vm15, %v1023_v2, 0.0  ;;  %v1028_v12 = vsel %vm2742_vm1, %v1024_v7, 0.0  ;;  %vm2781_vm1 = vmand %vm306_vm2, %vm1982_vm11  ;;  %vm1090_vm11 = vcmp.lt.s32.totalorder %v1896_v19, 81 }
 0x191   : > { %v1030_v44 = vmul.f32 %v1029_v8, %v1027_v11  ;;  %v1031_v25 = vmul.f32 %v1029_v8, %v1028_v12 }
 0x196   : > { %v1053_v6 = vpop.permute.xlu1 %1052  ;;  %v1038_v58 = vpop.permute.xlu0 %1037 }
 0x197   : > { %v1040_v37 = vsel %vm1039_vm3, %v2562_v59, %v1038_v58  ;;  %v1041_v4 = vsel %vm1039_vm3, %v1038_v58, %v2562_v59  ;;  %v1046_v59 = vstv %s2719_s24  ;;  %v1057_v51 = vsel %vm1056_vm0, %v1053_v6, %v2639_v56  ;;  %v1138_v9 = vpop.permute.xlu2 %1137  ;;  %s1612_s24 = scalar_lea.hbm %s1611_s22, 2 }
 0x198   : > { %v1044_v63 = vsel %vm3066_vm12, %v1040_v37, 0.0  ;;  %v1045_v33 = vsel %vm2758_vm8, %v1041_v4, 0.0  ;;  %v1058_v42 = vsel %vm1056_vm0, %v2639_v56, %v1053_v6  ;;  %vm1073_vm3 = vcmp.lt.s32.totalorder %v1896_v19, 82  ;;  %vm2802_vm8 = vmand %vm306_vm2, %vm3093_vm13  ;;  %p1613_p1 = scmp.ne.s32.totalorder %s1611_s22, %s1612_s24  ;;  %p1618_p2 = scmp.lt.s32.totalorder %s1616_s27, %s1612_s24 }
 0x199   : > { %v1047_v58 = vmul.f32 %v1046_v59, %v1044_v63  ;;  %v1048_v54 = vmul.f32 %v1046_v59, %v1045_v33  ;;  %v1061_v53 = vsel %vm1951_vm4, %v1057_v51, 0.0  ;;  %v1062_v32 = vsel %vm2781_vm1, %v1058_v42, 0.0  ;;  %vm2812_vm0 = vmand %vm306_vm2, %vm3071_vm7 }
 0x19a   : > { %v1032_v56 = vadd.f32 %v1030_v44, %v1015_v5  ;;  %v1033_v6 = vadd.f32 %v1031_v25, %v1016_v55  ;;  %vm1107_vm4 = vcmp.lt.s32.totalorder %v1896_v19, 80  ;;  %v1064_v41 = vmul.f32 %v1063_v14, %v1061_v53  ;;  %vm2837_vm7 = vmand %vm306_vm2, %vm3051_vm10  ;;  %p1614_p4 = pnand %p1613_p1, %p1809_p3  ;;  %p1619_p10 = por %p1618_p2, %p1617_p9 }
 0x19b   : > { %v1065_v0 = vmul.f32 %v1063_v14, %v1062_v32  ;;  %vm3098_vm1 = vnez %v2982_v43  ;;  %v1114_v4 = vstv %s2796_s28  ;;  %vm3101_vm10 = vnez %v3000_v18 }
 0x19c   : > { %v1049_v61 = vadd.f32 %v1047_v58, %v1032_v56  ;;  %v1050_v62 = vadd.f32 %v1048_v54, %v1033_v6  ;;  %vm1141_vm13 = vcmp.lt.s32.totalorder %v1896_v19, 78  ;;  %v1165_v56 = vstv %s2862_s5  ;;  %p1615_p8 = pneg %p1614_p4 }
 0x19e   : > { %v1072_v29 = vpop.permute.xlu1 %1071  ;;  %v1070_v35 = vpop.permute.xlu0 %1069  ;;  %v1066_v10 = vadd.f32 %v1064_v41, %v1049_v61  ;;  %v1067_v37 = vadd.f32 %v1065_v0, %v1050_v62  ;;  %p1620_p11 = pnand %p1619_p10, %p1615_p8 }
 0x19f   : > { %v1074_v20 = vsel %vm1073_vm3, %v1070_v35, %v1072_v29  ;;  %v1075_v46 = vsel %vm1073_vm3, %v1072_v29, %v1070_v35  ;;  %vm3102_vm3 = vnez %v3012_v57  ;;  %v1131_v35 = vstv %s2816_s29  ;;  %v1157_v47 = vpop.permute.xlu2 %1156 }
 0x1a0   : > { %v1078_v1 = vsel %vm3098_vm1, %v1074_v20, 0.0  ;;  %v1079_v2 = vsel %vm2802_vm8, %v1075_v46, 0.0  ;;  %vm2877_vm8 = vmand %vm306_vm2, %vm3048_vm6 }
 0x1a1   : > { %v1081_v30 = vmul.f32 %v1080_v27, %v1078_v1  ;;  %v1082_v39 = vmul.f32 %v1080_v27, %v1079_v2 }
 0x1a3   : > { %v1083_v21 = vadd.f32 %v1081_v30, %v1066_v10  ;;  %v1084_v3 = vadd.f32 %v1082_v39, %v1067_v37 }
 0x1a6   : > { %v1104_v22 = vpop.permute.xlu1 %1103  ;;  %v1089_v16 = vpop.permute.xlu0 %1088 }
 0x1a7   : > { %v1091_v48 = vsel %vm1090_vm11, %v2711_v26, %v1089_v16  ;;  %v1092_v7 = vsel %vm1090_vm11, %v1089_v16, %v2711_v26  ;;  %v1108_v8 = vsel %vm1107_vm4, %v1104_v22, %v1106_v45  ;;  %v1109_v26 = vsel %vm1107_vm4, %v1106_v45, %v1104_v22  ;;  %vm2855_vm11 = vmand %vm306_vm2, %vm3102_vm3 }
 0x1a8   : > { %v1095_v13 = vsel %vm3079_vm5, %v1091_v48, 0.0  ;;  %v1096_v43 = vsel %vm2812_vm0, %v1092_v7, 0.0  ;;  %vm1124_vm5 = vcmp.lt.s32.totalorder %v1896_v19, 79  ;;  %v1112_v12 = vsel %vm3101_vm10, %v1108_v8, 0.0  ;;  %vm2886_vm4 = vmand %vm306_vm2, %vm3037_vm9 }
 0x1a9   : > { %v1098_v24 = vmul.f32 %v1097_v38, %v1095_v13  ;;  %v1099_v11 = vmul.f32 %v1097_v38, %v1096_v43  ;;  %v1113_v31 = vsel %vm2837_vm7, %v1109_v26, 0.0  ;;  %v1115_v18 = vmul.f32 %v1114_v4, %v1112_v12 }
 0x1aa   : > { %v1116_v63 = vmul.f32 %v1114_v4, %v1113_v31  ;;  %vm1211_vm7 = vcmask 1040384   ;;  %vm1216_vm10 = vcmp.lt.s32.totalorder %v240_v17, 256 }
 0x1ab   : > { %v1100_v44 = vadd.f32 %v1098_v24, %v1083_v21  ;;  %v1101_v25 = vadd.f32 %v1099_v11, %v1084_v3 }
 0x1ad   : > { %v1117_v5 = vadd.f32 %v1115_v18, %v1100_v44  ;;  %v1118_v55 = vadd.f32 %v1116_v63, %v1101_v25 }
 0x1ae   : > { %v1123_v29 = vpop.permute.xlu1 %1122  ;;  %v1121_v59 = vpop.permute.xlu0 %1120 }
 0x1af   : > { %v1125_v57 = vsel %vm1124_vm5, %v1121_v59, %v1123_v29  ;;  %v1126_v33 = vsel %vm1124_vm5, %v1123_v29, %v1121_v59 }
 0x1b0   : > { %v1129_v49 = vsel %vm3087_vm14, %v1125_v57, 0.0  ;;  %v1130_v51 = vsel %vm2855_vm11, %v1126_v33, 0.0  ;;  %vm1158_vm14 = vcmp.lt.s32.totalorder %v1896_v19, 77 }
 0x1b1   : > { %v1132_v42 = vmul.f32 %v1131_v35, %v1129_v49  ;;  %v1133_v45 = vmul.f32 %v1131_v35, %v1130_v51 }
 0x1b3   : > { %v1134_v14 = vadd.f32 %v1132_v42, %v1117_v5  ;;  %v1135_v53 = vadd.f32 %v1133_v45, %v1118_v55 }
 0x1b6   : > { %v1140_v32 = vpop.permute.xlu0 %1139  ;;  %v1155_v6 = vpop.permute.xlu1 %1154 }
 0x1b7   : > { %v1142_v36 = vsel %vm1141_vm13, %v1138_v9, %v1140_v32  ;;  %v1143_v20 = vsel %vm1141_vm13, %v1140_v32, %v1138_v9  ;;  %v1159_v46 = vsel %vm1158_vm14, %v1155_v6, %v1157_v47  ;;  %v1160_v27 = vsel %vm1158_vm14, %v1157_v47, %v1155_v6 }
 0x1b8   : > { %v1146_v19 = vsel %vm3043_vm15, %v1142_v36, 0.0  ;;  %v1147_v23 = vsel %vm2877_vm8, %v1143_v20, 0.0  ;;  %v1163_v34 = vsel %vm3066_vm12, %v1159_v46, 0.0  ;;  %v1164_v61 = vsel %vm2886_vm4, %v1160_v27, 0.0 }
 0x1b9   : > { %v1149_v62 = vmul.f32 %v1148_v28, %v1146_v19  ;;  %v1150_v41 = vmul.f32 %v1148_v28, %v1147_v23  ;;  %v1166_v0 = vmul.f32 %v1165_v56, %v1163_v34  ;;  %v1167_v22 = vmul.f32 %v1165_v56, %v1164_v61 }
 0x1bb   : > { %v1151_v52 = vadd.f32 %v1149_v62, %v1134_v14  ;;  %v1152_v16 = vadd.f32 %v1150_v41, %v1135_v53 }
 0x1bd   : > { %v1168_v1 = vadd.f32 %v1166_v0, %v1151_v52  ;;  %v1169_v2 = vadd.f32 %v1167_v22, %v1152_v16 }
 0x1bf   : > { %v1390_v50 = vmul.f32 -1.442695, %v1168_v1  ;;  %v1391_v48 = vmul.f32 -1.442695, %v1169_v2 }
 0x1c1   : > { %1513 = vpow2.f32 %v1390_v50 }
 0x1c2   : > { %1515 = vpow2.f32 %v1391_v48 }
 0x1c7   : > { %v1514_v7 = vpop.eup %1513 }
 0x1c8   : > { %v1516_v40 = vpop.eup %1515  ;;  %v1176_v38 = vadd.f32 1.0, %v1514_v7 }
 0x1c9   : > { %v1177_v13 = vadd.f32 1.0, %v1516_v40 }
 0x1ca   : > { %1517 = vrcp.f32 %v1176_v38  ;;  %vm1183_vm6 = vweird.f32 %v1176_v38  ;;  %v1189_v11 = vand.u32 2147483648, %v1176_v38  ;;  %v1187_v31 = vand.u32 2147483647, %v1176_v38 }
 0x1cb   : > { %1519 = vrcp.f32 %v1177_v13  ;;  %v1204_v10 = vand.u32 2147483648, %v1177_v13  ;;  %v1202_v4 = vand.u32 2147483647, %v1177_v13  ;;  %vm1198_vm2 = vweird.f32 %v1177_v13 }
 0x1cc   : > { %v1190_v35 = vor.u32 1.1754944e-38, %v1189_v11  ;;  %vm1188_vm5 = vcmp.eq.f32.partialorder %v1187_v31, 8.507059e+37 }
 0x1cd   : > { %v1205_v21 = vor.u32 1.1754944e-38, %v1204_v10  ;;  %vm1203_vm1 = vcmp.eq.f32.partialorder %v1202_v4, 8.507059e+37 }
 0x1d0   : > { %v1518_v43 = vpop.eup %1517 }
 0x1d1   : > { %v1520_v15 = vpop.eup %1519  ;;  %v1179_v8 = vmul.f32 %v1518_v43, %v1176_v38  ;;  %vm1184_vm9 = vweird.f32 %v1518_v43 }
 0x1d2   : > { %v1194_v26 = vmul.f32 %v1520_v15, %v1177_v13  ;;  %vm1199_vm15 = vweird.f32 %v1520_v15  ;;  %vm2905_vm12 = vmor %vm1183_vm6, %vm1184_vm9 }
 0x1d3   : > { %v1180_v30 = vsub.f32 1.0, %v1179_v8  ;;  %vm1200_vm0 = vmor %vm1198_vm2, %vm1199_vm15 }
 0x1d4   : > { %v1195_v39 = vsub.f32 1.0, %v1194_v26 }
 0x1d5   : > { %v1181_v9 = vmul.f32 %v1518_v43, %v1180_v30 }
 0x1d6   : > { %v1196_v37 = vmul.f32 %v1520_v15, %v1195_v39 }
 0x1d7   : > { %v1182_v24 = vadd.f32 %v1518_v43, %v1181_v9 }
 0x1d8   : > { %v1197_v60 = vadd.f32 %v1520_v15, %v1196_v37 }
 0x1d9   : > { %v1186_v3 = vsel %vm2905_vm12, %v1518_v43, %v1182_v24 }
 0x1da   : > { %v1201_v29 = vsel %vm1200_vm0, %v1520_v15, %v1197_v60  ;;  %v1191_v63 = vsel %vm1188_vm5, %v1190_v35, %v1186_v3 }
 0x1db   : > { %v1206_v59 = vsel %vm1203_vm1, %v1205_v21, %v1201_v29 }
 0x1dc   : > { %v1210_v18 = vrot.slane %v1206_v59, 7 }
 0x1de   : > { %v1212_v57 = vsel %vm1211_vm7, %v1191_v63, %v1210_v18 }
 0x1df   : > { %1218 = vst.msk [vmem:[%s217_s16] sm:$0x3] %vm1216_vm10, %v1212_v57 }
 0x1e0   : > { %1623 = shalt.err (!%p1620_p11)
}
 0x1e1   : > { %1407 = dma.vmem_to_hbm [thread:$0]  (%p1809_p3), %s1233_s18, 32, %s1235_s20, %s1220_s21  }
 0x1e2 PF: > { %s1246_s8 = sand.u32 1, %s1658_s12   ;;  %p3111_p12 = scmp.ge.s32.totalorder %s1670_s15, 2 }
 0x1e3   : > { %s1247_s4 = scalar_lea.sflag [#allocation4], %s1246_s8 }
 0x1e4   : > { %p1421_p13 = pnand %p3111_p12, %p1778_p6 }
 0x1e6   : > { %p1422_p0 = pneg %p1421_p13 }
 0x1e8   : > { %1653 = dma.done.wait (%p1422_p0), %s1247_s4, 32  }
 0x1e9   : > { %1655 = vsyncadd (%p1422_p0), %s1247_s4, 4294967264  ;;  %p18_p5 = scmp.ge.s32.totalorder %s1799_s30, 4   ;;  %s3112_s12 = smov %s1662_s13 }
 0x1ea   : > { %s3113_s13 = smov %s1666_s14  ;;  %s3114_s14 = smov %s1815_s7 }
 0x1eb   : > { %s3115_s15 = smov %s1799_s30  ;;  %20 = sbr.rel (!%p18_p5) target bundleno = 7 (0x7), region = 87 }
 0x1f0   :  { %1253 = vsyncpa [#allocation3], 1 }
 0x1f1   :  { %1255 = vsyncpa [#allocation3 + $0x1], 1 }
 0x1f2   :  { %1256 = vsyncpa [#allocation8], 1 }
 0x1f3   :  { %1258 = vsyncpa [#allocation8 + $0x1], 1 }
 0x1f4   :  { %1259 = vsyncpa [#allocation4], 1 }
 0x1f5   :  { %1261 = vsyncpa [#allocation4 + $0x1], 1 }
 0x1f6   :  { %1262 = vsyncpa [#allocation5], 1 }
 0x1f7   :  { %1264 = vsyncpa [#allocation5 + $0x1], 1 }

</bundles_post_ra>
